<compile_context>
chip_gen: v7x
topology: tpu7x:2x2x1
jax: 0.10.0
libtpu: 0.0.40
codegen_flags: <defaults>
</compile_context>

<pallas_src>
import jax
import jax.numpy as jnp
from jax.experimental import pallas as pl
from jax.experimental.pallas import tpu as pltpu

# ----------------------------- hyperparameters ------------------------------
MODEL_NAME = "HousE"
NENTITY = 32
NRELATION = 8
HIDDEN_DIM_IN = 32          # `hidden_dim` argument of the module
HOUSE_DIM = 4               # HD
HOUSE_NUM_ARG = 4
HOUSD_NUM = 2               # HSD
THRED = 0.5
GAMMA = 6.0
EPSILON = 2.0

HIDDEN_DIM = HIDDEN_DIM_IN // HOUSE_DIM                 # D = entity_dim = relation_dim = 8
HOUSE_NUM = HOUSE_NUM_ARG + 2 * HOUSD_NUM               # HN = 8 (HousE / HousE_plus)
EMB_RANGE = (GAMMA + EPSILON) / (HIDDEN_DIM * HOUSE_DIM ** 0.5)

B = 2    # batch size
N = 8    # negative sample size


# ------------------------------- Pallas kernel ------------------------------
def house_tail_batch_kernel(head_ref, tail_ref, r_ref, kdh_ref, ksh_ref,
                            kdt_ref, kst_ref, out_ref):
    """Block shapes:
       head_ref: (1, HD, D, 1)       per-batch positive head
       tail_ref: (1, HD, D, lb)      lane-streamed negative tails
       r_ref:    (1, HN*HD, D, 1)    per-batch raw relation (chunk c, comp h at c*HD+h)
       k*_ref:   (1, HSD, D, 1)      per-batch k_dir / k_scale
       out_ref:  (1, 1, lb)          lane-dense scores
    """
    D, HD, HN, HSD = HIDDEN_DIM, HOUSE_DIM, HOUSE_NUM, HOUSD_NUM

    head = [head_ref[0, h] for h in range(HD)]          # (D, 1) each — per batch
    tail = [tail_ref[0, h] for h in range(HD)]          # (D, lb) each — per negative

    # k_head / k_tail = k_dir * |k_scale|, upper-clamped at thred — per batch, (D,1).
    k_head = [jnp.minimum(kdh_ref[0, i] * jnp.abs(ksh_ref[0, i]), THRED)
              for i in range(HSD)]
    k_tail = [jnp.minimum(kdt_ref[0, i] * jnp.abs(kst_ref[0, i]), THRED)
              for i in range(HSD)]

    def normed_chunk(c):
        # F.normalize(p=2) of relation chunk c over house_dim — per batch, on (D,1)
        # slabs (one vreg per op); rsqrt goes to the EUP slot.
        comp = [r_ref[0, c * HD + h] for h in range(HD)]
        ss = comp[0] * comp[0]
        for h in range(1, HD):
            ss = ss + comp[h] * comp[h]
        inv = jax.lax.rsqrt(jnp.maximum(ss, 1e-24))
        return [x * inv for x in comp]

    def reflect(x, rv, coef):
        # Householder reflection: x - coef * <rv, x> * rv   (HD-reduce = 3 VPU adds).
        dot = x[0] * rv[0]
        for h in range(1, HD):
            dot = dot + x[h] * rv[h]
        sc = coef * dot
        return [x[h] - sc * rv[h] for h in range(HD)]

    # ---- HousE, tail-batch branch ----
    # Head path is independent of the negative -> runs entirely at lane width 1.
    for i in range(HSD):
        head = reflect(head, normed_chunk(HN - 1 - i), k_head[i])
    for i in range(HSD, HN - HSD):
        head = reflect(head, normed_chunk(HN - 1 - i), 2.0)
    # Tail path is per-negative; per-batch chunk / coef lane-broadcast inside the ops.
    for i in range(HSD):
        tail = reflect(tail, normed_chunk(i), k_tail[i])

    # score = gamma - sum_D || head - tail ||_2   (L2 over house_dim, sum over D)
    d = head[0] - tail[0]                                # (D,1)-(D,lb) -> (D,lb)
    ss = d * d
    for h in range(1, HD):
        d = head[h] - tail[h]
        ss = ss + d * d
    out_ref[0] = GAMMA - jnp.sum(jnp.sqrt(ss), axis=0, keepdims=True)   # (1, lb)


def _round_up(x, m):
    return ((x + m - 1) // m) * m


@jax.jit
def house_tail_batch(head, tail_t, r_raw, kdh, ksh, kdt, kst):
    """HousE score, tail-batch mode.

    head:   (B, D, HD)       gathered positive heads (module layout, tiny)
    tail_t: (B, HD, D, N)    gathered negative tails, already in kernel layout
                             (comes straight from the pre-transposed entity table)
    r_raw:  (B, D, HD*HN)    gathered (un-normalized) relations
    kdh/kdt:(B, 1, HSD)      ksh/kst: (B, D, HSD)
    returns (B, N) scores.
    """
    D, HD, HN, HSD = HIDDEN_DIM, HOUSE_DIM, HOUSE_NUM, HOUSD_NUM
    b, n = tail_t.shape[0], tail_t.shape[-1]

    lb = min(_round_up(n, 128), 8192)       # lane-block over negatives
    npad = _round_up(n, lb)
    grid = (b, npad // lb)

    # ---- per-batch slabs (lane extent 1): NOT replicated across negatives ----
    head_k = jnp.transpose(head, (0, 2, 1))[..., None]                     # (B,HD,D,1)
    r_k = jnp.transpose(r_raw.reshape(b, D, HN, HD),
                        (0, 2, 3, 1)).reshape(b, HN * HD, D)[..., None]    # (B,HN*HD,D,1)

    def prep_k(x):                                                         # -> (B,HSD,D,1)
        return jnp.transpose(jnp.broadcast_to(x, (b, D, HSD)), (0, 2, 1))[..., None]

    kdh_k, ksh_k, kdt_k, kst_k = (prep_k(x) for x in (kdh, ksh, kdt, kst))

    # ---- lane-streamed tail: pad the negative axis to a multiple of lb ----
    tail_k = tail_t
    if npad != n:
        tail_k = jnp.pad(tail_k, ((0, 0), (0, 0), (0, 0), (0, npad - n)))

    # TODO(synk): for very large NENTITY/N, fuse the tail gather into the kernel via
    # PrefetchScalarGridSpec + memory_space=pl.ANY row gathers, and consider a bf16
    # entity stream (upcast in-kernel) to halve the dominant HBM stream.
    out = pl.pallas_call(
        house_tail_batch_kernel,
        out_shape=jax.ShapeDtypeStruct((b, 1, npad), jnp.float32),
        grid=grid,
        in_specs=[
            pl.BlockSpec((1, HD, D, 1), lambda i, j: (i, 0, 0, 0)),        # head
            pl.BlockSpec((1, HD, D, lb), lambda i, j: (i, 0, 0, j)),       # tail
            pl.BlockSpec((1, HN * HD, D, 1), lambda i, j: (i, 0, 0, 0)),   # relation
            pl.BlockSpec((1, HSD, D, 1), lambda i, j: (i, 0, 0, 0)),       # k_dir_head
            pl.BlockSpec((1, HSD, D, 1), lambda i, j: (i, 0, 0, 0)),       # k_scale_head
            pl.BlockSpec((1, HSD, D, 1), lambda i, j: (i, 0, 0, 0)),       # k_dir_tail
            pl.BlockSpec((1, HSD, D, 1), lambda i, j: (i, 0, 0, 0)),       # k_scale_tail
        ],
        out_specs=pl.BlockSpec((1, 1, lb), lambda i, j: (i, 0, j)),
        # Both grid axes are independent; parallel lets v7x shard across its 2 TCs.
        compiler_params=pltpu.CompilerParams(
            dimension_semantics=("parallel", "parallel")),
    )(head_k, tail_k, r_k, kdh_k, ksh_k, kdt_k, kst_k)
    return out[:, 0, :n]


# -------------------------- pure-JAX reference ------------------------------
def house_tail_batch_ref(head, tail, r_raw, kdh, ksh, kdt, kst):
    HD, HN, HSD = HOUSE_DIM, HOUSE_NUM, HOUSD_NUM
    chunks = jnp.split(r_raw, HN, axis=-1)
    chunks = [c / jnp.maximum(jnp.sqrt(jnp.sum(c * c, -1, keepdims=True)), 1e-12)
              for c in chunks]
    k_head = jnp.minimum(kdh * jnp.abs(ksh), THRED)[:, None]   # (B,1,D,HSD)
    k_tail = jnp.minimum(kdt * jnp.abs(kst), THRED)[:, None]
    head = head[:, None]                                       # (B,1,D,HD)
    r_chunks = [c[:, None] for c in chunks]                    # (B,1,D,HD)
    for i in range(HSD):
        j = HN - 1 - i
        rj = r_chunks[j]
        head = head - k_head[..., i:i + 1] * jnp.sum(rj * head, -1, keepdims=True) * rj
    for i in range(HSD, HN - HSD):
        j = HN - 1 - i
        rj = r_chunks[j]
        head = head - 2.0 * jnp.sum(rj * head, -1, keepdims=True) * rj
    for i in range(HSD):
        ri = r_chunks[i]
        tail = tail - k_tail[..., i:i + 1] * jnp.sum(ri * tail, -1, keepdims=True) * ri
    diff = head - tail
    cos = jnp.sum(jnp.sqrt(jnp.sum(diff * diff, -1)), -1)
    return GAMMA - cos


# --------------------------------- main --------------------------------------
if __name__ == "__main__":
    key = jax.random.PRNGKey(0)
    ks = jax.random.split(key, 8)

    # Deterministic parameter init (matches module __init__ shapes / ranges)
    entity_embedding = jax.random.uniform(
        ks[0], (NENTITY, HIDDEN_DIM, HOUSE_DIM), jnp.float32, -EMB_RANGE, EMB_RANGE)
    relation_embedding = jax.random.uniform(
        ks[1], (NRELATION, HIDDEN_DIM, HOUSE_DIM * HOUSE_NUM), jnp.float32,
        -EMB_RANGE, EMB_RANGE)
    k_dir_head = jax.random.uniform(
        ks[2], (NRELATION, 1, HOUSD_NUM), jnp.float32, -0.01, 0.01)
    k_dir_tail = -k_dir_head
    k_scale_head = jax.random.uniform(
        ks[3], (NRELATION, HIDDEN_DIM, HOUSD_NUM), jnp.float32, -1.0, 1.0)
    k_scale_tail = jax.random.uniform(
        ks[4], (NRELATION, HIDDEN_DIM, HOUSD_NUM), jnp.float32, -1.0, 1.0)
    # relation_weight only used by the *_plus variants; unused in 'HousE'.

    # Sample: tail-batch mode — (positive triples, negative tail ids)
    head_ids = jax.random.randint(ks[5], (B,), 0, NENTITY, jnp.int32)
    rel_ids = jax.random.randint(ks[6], (B,), 0, NRELATION, jnp.int32)
    tail_ids = jax.random.randint(ks[7], (B, N), 0, NENTITY, jnp.int32)

    # One-time pre-transpose of the entity table: the tail gather then emits the
    # (B, HD, D, N) kernel layout directly — no per-call transpose of the big stream.
    ent_t = jnp.transpose(entity_embedding, (2, 1, 0))        # (HD, D, NENTITY)

    # Glue: embedding gathers (torch.index_select equivalents)
    head = entity_embedding[head_ids]                          # (B, D, HD) — tiny
    tail_t = jax.vmap(lambda ids: ent_t[:, :, ids])(tail_ids)  # (B, HD, D, N)
    r_g = relation_embedding[rel_ids]                          # (B, D, HD*HN)
    kdh = k_dir_head[rel_ids]                                  # (B, 1, HSD)
    ksh = k_scale_head[rel_ids]                                # (B, D, HSD)
    kdt = k_dir_tail[rel_ids]                                  # (B, 1, HSD)
    kst = k_scale_tail[rel_ids]                                # (B, D, HSD)

    score = house_tail_batch(head, tail_t, r_g, kdh, ksh, kdt, kst)
    score = jax.block_until_ready(score)

    # Reference check (module-layout gather only used for verification)
    tail_mod = entity_embedding[tail_ids]                      # (B, N, D, HD)
    ref = house_tail_batch_ref(head, tail_mod, r_g, kdh, ksh, kdt, kst)
    assert score.shape == (B, N)
    # rsqrt-based normalization vs. sqrt+divide reference: differences ~1e-6.
    assert jnp.allclose(score, ref, rtol=1e-4, atol=1e-4), (score, ref)

    # TODO(synk): 'head-batch' mode and the HousE_r / *_plus variants follow the same
    # reflection-loop structure and are not instantiated here; at toy sizes the whole
    # forward (gathers included) could also be folded into a single grid=(1,) call.
    print("KERNEL_OK")
</pallas_src>

<mosaic_0001>
module attributes {stable_mosaic.version = 11 : i64} {
  func.func @house_tail_batch_kernel(%arg0: i32, %arg1: i32, %arg2: memref<1x4x8x1xf32, #tpu.memory_space<vmem>>, %arg3: memref<1x4x8x128xf32, #tpu.memory_space<vmem>>, %arg4: memref<1x32x8x1xf32, #tpu.memory_space<vmem>>, %arg5: memref<1x2x8x1xf32, #tpu.memory_space<vmem>>, %arg6: memref<1x2x8x1xf32, #tpu.memory_space<vmem>>, %arg7: memref<1x2x8x1xf32, #tpu.memory_space<vmem>>, %arg8: memref<1x2x8x1xf32, #tpu.memory_space<vmem>>, %arg9: memref<1x1x128xf32, #tpu.memory_space<vmem>>) attributes {dimension_semantics = [#tpu.dimension_semantics<parallel>, #tpu.dimension_semantics<parallel>], iteration_bounds = array<i64: 2, 1>, scalar_prefetch = 0 : i64, scratch_operands = 0 : i64, tpu.core_type = #tpu.core_type<tc>, window_params = [{transform_indices = @transform_0, window_bounds = array<i64: 1, 4, 8, 1>}, {transform_indices = @transform_1, window_bounds = array<i64: 1, 4, 8, 128>}, {transform_indices = @transform_2, window_bounds = array<i64: 1, 32, 8, 1>}, {transform_indices = @transform_3, window_bounds = array<i64: 1, 2, 8, 1>}, {transform_indices = @transform_4, window_bounds = array<i64: 1, 2, 8, 1>}, {transform_indices = @transform_5, window_bounds = array<i64: 1, 2, 8, 1>}, {transform_indices = @transform_6, window_bounds = array<i64: 1, 2, 8, 1>}, {transform_indices = @transform_7, window_bounds = array<i64: 1, 1, 128>}]} {
    %c0 = arith.constant 0 : index
    %c0_0 = arith.constant 0 : index
    %c0_1 = arith.constant 0 : index
    %c0_2 = arith.constant 0 : index
    %0 = vector.load %arg2[%c0, %c0_0, %c0_1, %c0_2] : memref<1x4x8x1xf32, #tpu.memory_space<vmem>>, vector<1x1x8x1xf32>
    %1 = vector.shape_cast %0 : vector<1x1x8x1xf32> to vector<8x1xf32>
    %c0_3 = arith.constant 0 : index
    %c1 = arith.constant 1 : index
    %c0_4 = arith.constant 0 : index
    %c0_5 = arith.constant 0 : index
    %2 = vector.load %arg2[%c0_3, %c1, %c0_4, %c0_5] : memref<1x4x8x1xf32, #tpu.memory_space<vmem>>, vector<1x1x8x1xf32>
    %3 = vector.shape_cast %2 : vector<1x1x8x1xf32> to vector<8x1xf32>
    %c0_6 = arith.constant 0 : index
    %c2 = arith.constant 2 : index
    %c0_7 = arith.constant 0 : index
    %c0_8 = arith.constant 0 : index
    %4 = vector.load %arg2[%c0_6, %c2, %c0_7, %c0_8] : memref<1x4x8x1xf32, #tpu.memory_space<vmem>>, vector<1x1x8x1xf32>
    %5 = vector.shape_cast %4 : vector<1x1x8x1xf32> to vector<8x1xf32>
    %c0_9 = arith.constant 0 : index
    %c3 = arith.constant 3 : index
    %c0_10 = arith.constant 0 : index
    %c0_11 = arith.constant 0 : index
    %6 = vector.load %arg2[%c0_9, %c3, %c0_10, %c0_11] : memref<1x4x8x1xf32, #tpu.memory_space<vmem>>, vector<1x1x8x1xf32>
    %7 = vector.shape_cast %6 : vector<1x1x8x1xf32> to vector<8x1xf32>
    %c0_12 = arith.constant 0 : index
    %c0_13 = arith.constant 0 : index
    %c0_14 = arith.constant 0 : index
    %c0_15 = arith.constant 0 : index
    %8 = vector.load %arg3[%c0_12, %c0_13, %c0_14, %c0_15] : memref<1x4x8x128xf32, #tpu.memory_space<vmem>>, vector<1x1x8x128xf32>
    %9 = vector.shape_cast %8 : vector<1x1x8x128xf32> to vector<8x128xf32>
    %c0_16 = arith.constant 0 : index
    %c1_17 = arith.constant 1 : index
    %c0_18 = arith.constant 0 : index
    %c0_19 = arith.constant 0 : index
    %10 = vector.load %arg3[%c0_16, %c1_17, %c0_18, %c0_19] : memref<1x4x8x128xf32, #tpu.memory_space<vmem>>, vector<1x1x8x128xf32>
    %11 = vector.shape_cast %10 : vector<1x1x8x128xf32> to vector<8x128xf32>
    %c0_20 = arith.constant 0 : index
    %c2_21 = arith.constant 2 : index
    %c0_22 = arith.constant 0 : index
    %c0_23 = arith.constant 0 : index
    %12 = vector.load %arg3[%c0_20, %c2_21, %c0_22, %c0_23] : memref<1x4x8x128xf32, #tpu.memory_space<vmem>>, vector<1x1x8x128xf32>
    %13 = vector.shape_cast %12 : vector<1x1x8x128xf32> to vector<8x128xf32>
    %c0_24 = arith.constant 0 : index
    %c3_25 = arith.constant 3 : index
    %c0_26 = arith.constant 0 : index
    %c0_27 = arith.constant 0 : index
    %14 = vector.load %arg3[%c0_24, %c3_25, %c0_26, %c0_27] : memref<1x4x8x128xf32, #tpu.memory_space<vmem>>, vector<1x1x8x128xf32>
    %15 = vector.shape_cast %14 : vector<1x1x8x128xf32> to vector<8x128xf32>
    %c0_28 = arith.constant 0 : index
    %c0_29 = arith.constant 0 : index
    %c0_30 = arith.constant 0 : index
    %c0_31 = arith.constant 0 : index
    %16 = vector.load %arg5[%c0_28, %c0_29, %c0_30, %c0_31] : memref<1x2x8x1xf32, #tpu.memory_space<vmem>>, vector<1x1x8x1xf32>
    %17 = vector.shape_cast %16 : vector<1x1x8x1xf32> to vector<8x1xf32>
    %c0_32 = arith.constant 0 : index
    %c0_33 = arith.constant 0 : index
    %c0_34 = arith.constant 0 : index
    %c0_35 = arith.constant 0 : index
    %18 = vector.load %arg6[%c0_32, %c0_33, %c0_34, %c0_35] : memref<1x2x8x1xf32, #tpu.memory_space<vmem>>, vector<1x1x8x1xf32>
    %19 = vector.shape_cast %18 : vector<1x1x8x1xf32> to vector<8x1xf32>
    %20 = math.absf %19 : vector<8x1xf32>
    %21 = arith.mulf %17, %20 : vector<8x1xf32>
    %cst = arith.constant 5.000000e-01 : f32
    %22 = vector.broadcast %cst : f32 to vector<8x1xf32>
    %23 = arith.minimumf %21, %22 : vector<8x1xf32>
    %c0_36 = arith.constant 0 : index
    %c1_37 = arith.constant 1 : index
    %c0_38 = arith.constant 0 : index
    %c0_39 = arith.constant 0 : index
    %24 = vector.load %arg5[%c0_36, %c1_37, %c0_38, %c0_39] : memref<1x2x8x1xf32, #tpu.memory_space<vmem>>, vector<1x1x8x1xf32>
    %25 = vector.shape_cast %24 : vector<1x1x8x1xf32> to vector<8x1xf32>
    %c0_40 = arith.constant 0 : index
    %c1_41 = arith.constant 1 : index
    %c0_42 = arith.constant 0 : index
    %c0_43 = arith.constant 0 : index
    %26 = vector.load %arg6[%c0_40, %c1_41, %c0_42, %c0_43] : memref<1x2x8x1xf32, #tpu.memory_space<vmem>>, vector<1x1x8x1xf32>
    %27 = vector.shape_cast %26 : vector<1x1x8x1xf32> to vector<8x1xf32>
    %28 = math.absf %27 : vector<8x1xf32>
    %29 = arith.mulf %25, %28 : vector<8x1xf32>
    %cst_44 = arith.constant 5.000000e-01 : f32
    %30 = vector.broadcast %cst_44 : f32 to vector<8x1xf32>
    %31 = arith.minimumf %29, %30 : vector<8x1xf32>
    %c0_45 = arith.constant 0 : index
    %c0_46 = arith.constant 0 : index
    %c0_47 = arith.constant 0 : index
    %c0_48 = arith.constant 0 : index
    %32 = vector.load %arg7[%c0_45, %c0_46, %c0_47, %c0_48] : memref<1x2x8x1xf32, #tpu.memory_space<vmem>>, vector<1x1x8x1xf32>
    %33 = vector.shape_cast %32 : vector<1x1x8x1xf32> to vector<8x1xf32>
    %c0_49 = arith.constant 0 : index
    %c0_50 = arith.constant 0 : index
    %c0_51 = arith.constant 0 : index
    %c0_52 = arith.constant 0 : index
    %34 = vector.load %arg8[%c0_49, %c0_50, %c0_51, %c0_52] : memref<1x2x8x1xf32, #tpu.memory_space<vmem>>, vector<1x1x8x1xf32>
    %35 = vector.shape_cast %34 : vector<1x1x8x1xf32> to vector<8x1xf32>
    %36 = math.absf %35 : vector<8x1xf32>
    %37 = arith.mulf %33, %36 : vector<8x1xf32>
    %cst_53 = arith.constant 5.000000e-01 : f32
    %38 = vector.broadcast %cst_53 : f32 to vector<8x1xf32>
    %39 = arith.minimumf %37, %38 : vector<8x1xf32>
    %c0_54 = arith.constant 0 : index
    %c1_55 = arith.constant 1 : index
    %c0_56 = arith.constant 0 : index
    %c0_57 = arith.constant 0 : index
    %40 = vector.load %arg7[%c0_54, %c1_55, %c0_56, %c0_57] : memref<1x2x8x1xf32, #tpu.memory_space<vmem>>, vector<1x1x8x1xf32>
    %41 = vector.shape_cast %40 : vector<1x1x8x1xf32> to vector<8x1xf32>
    %c0_58 = arith.constant 0 : index
    %c1_59 = arith.constant 1 : index
    %c0_60 = arith.constant 0 : index
    %c0_61 = arith.constant 0 : index
    %42 = vector.load %arg8[%c0_58, %c1_59, %c0_60, %c0_61] : memref<1x2x8x1xf32, #tpu.memory_space<vmem>>, vector<1x1x8x1xf32>
    %43 = vector.shape_cast %42 : vector<1x1x8x1xf32> to vector<8x1xf32>
    %44 = math.absf %43 : vector<8x1xf32>
    %45 = arith.mulf %41, %44 : vector<8x1xf32>
    %cst_62 = arith.constant 5.000000e-01 : f32
    %46 = vector.broadcast %cst_62 : f32 to vector<8x1xf32>
    %47 = arith.minimumf %45, %46 : vector<8x1xf32>
    %c0_63 = arith.constant 0 : index
    %c28 = arith.constant 28 : index
    %c0_64 = arith.constant 0 : index
    %c0_65 = arith.constant 0 : index
    %48 = vector.load %arg4[%c0_63, %c28, %c0_64, %c0_65] : memref<1x32x8x1xf32, #tpu.memory_space<vmem>>, vector<1x1x8x1xf32>
    %49 = vector.shape_cast %48 : vector<1x1x8x1xf32> to vector<8x1xf32>
    %c0_66 = arith.constant 0 : index
    %c29 = arith.constant 29 : index
    %c0_67 = arith.constant 0 : index
    %c0_68 = arith.constant 0 : index
    %50 = vector.load %arg4[%c0_66, %c29, %c0_67, %c0_68] : memref<1x32x8x1xf32, #tpu.memory_space<vmem>>, vector<1x1x8x1xf32>
    %51 = vector.shape_cast %50 : vector<1x1x8x1xf32> to vector<8x1xf32>
    %c0_69 = arith.constant 0 : index
    %c30 = arith.constant 30 : index
    %c0_70 = arith.constant 0 : index
    %c0_71 = arith.constant 0 : index
    %52 = vector.load %arg4[%c0_69, %c30, %c0_70, %c0_71] : memref<1x32x8x1xf32, #tpu.memory_space<vmem>>, vector<1x1x8x1xf32>
    %53 = vector.shape_cast %52 : vector<1x1x8x1xf32> to vector<8x1xf32>
    %c0_72 = arith.constant 0 : index
    %c31 = arith.constant 31 : index
    %c0_73 = arith.constant 0 : index
    %c0_74 = arith.constant 0 : index
    %54 = vector.load %arg4[%c0_72, %c31, %c0_73, %c0_74] : memref<1x32x8x1xf32, #tpu.memory_space<vmem>>, vector<1x1x8x1xf32>
    %55 = vector.shape_cast %54 : vector<1x1x8x1xf32> to vector<8x1xf32>
    %56 = arith.mulf %49, %49 : vector<8x1xf32>
    %57 = arith.mulf %51, %51 : vector<8x1xf32>
    %58 = arith.addf %56, %57 : vector<8x1xf32>
    %59 = arith.mulf %53, %53 : vector<8x1xf32>
    %60 = arith.addf %58, %59 : vector<8x1xf32>
    %61 = arith.mulf %55, %55 : vector<8x1xf32>
    %62 = arith.addf %60, %61 : vector<8x1xf32>
    %cst_75 = arith.constant 1.000000e-24 : f32
    %63 = vector.broadcast %cst_75 : f32 to vector<8x1xf32>
    %64 = arith.maximumf %62, %63 : vector<8x1xf32>
    %65 = math.rsqrt %64 : vector<8x1xf32>
    %66 = arith.mulf %49, %65 : vector<8x1xf32>
    %67 = arith.mulf %51, %65 : vector<8x1xf32>
    %68 = arith.mulf %53, %65 : vector<8x1xf32>
    %69 = arith.mulf %55, %65 : vector<8x1xf32>
    %70 = arith.mulf %1, %66 : vector<8x1xf32>
    %71 = arith.mulf %3, %67 : vector<8x1xf32>
    %72 = arith.addf %70, %71 : vector<8x1xf32>
    %73 = arith.mulf %5, %68 : vector<8x1xf32>
    %74 = arith.addf %72, %73 : vector<8x1xf32>
    %75 = arith.mulf %7, %69 : vector<8x1xf32>
    %76 = arith.addf %74, %75 : vector<8x1xf32>
    %77 = arith.mulf %23, %76 : vector<8x1xf32>
    %78 = arith.mulf %77, %66 : vector<8x1xf32>
    %79 = arith.subf %1, %78 : vector<8x1xf32>
    %80 = arith.mulf %77, %67 : vector<8x1xf32>
    %81 = arith.subf %3, %80 : vector<8x1xf32>
    %82 = arith.mulf %77, %68 : vector<8x1xf32>
    %83 = arith.subf %5, %82 : vector<8x1xf32>
    %84 = arith.mulf %77, %69 : vector<8x1xf32>
    %85 = arith.subf %7, %84 : vector<8x1xf32>
    %c0_76 = arith.constant 0 : index
    %c24 = arith.constant 24 : index
    %c0_77 = arith.constant 0 : index
    %c0_78 = arith.constant 0 : index
    %86 = vector.load %arg4[%c0_76, %c24, %c0_77, %c0_78] : memref<1x32x8x1xf32, #tpu.memory_space<vmem>>, vector<1x1x8x1xf32>
    %87 = vector.shape_cast %86 : vector<1x1x8x1xf32> to vector<8x1xf32>
    %c0_79 = arith.constant 0 : index
    %c25 = arith.constant 25 : index
    %c0_80 = arith.constant 0 : index
    %c0_81 = arith.constant 0 : index
    %88 = vector.load %arg4[%c0_79, %c25, %c0_80, %c0_81] : memref<1x32x8x1xf32, #tpu.memory_space<vmem>>, vector<1x1x8x1xf32>
    %89 = vector.shape_cast %88 : vector<1x1x8x1xf32> to vector<8x1xf32>
    %c0_82 = arith.constant 0 : index
    %c26 = arith.constant 26 : index
    %c0_83 = arith.constant 0 : index
    %c0_84 = arith.constant 0 : index
    %90 = vector.load %arg4[%c0_82, %c26, %c0_83, %c0_84] : memref<1x32x8x1xf32, #tpu.memory_space<vmem>>, vector<1x1x8x1xf32>
    %91 = vector.shape_cast %90 : vector<1x1x8x1xf32> to vector<8x1xf32>
    %c0_85 = arith.constant 0 : index
    %c27 = arith.constant 27 : index
    %c0_86 = arith.constant 0 : index
    %c0_87 = arith.constant 0 : index
    %92 = vector.load %arg4[%c0_85, %c27, %c0_86, %c0_87] : memref<1x32x8x1xf32, #tpu.memory_space<vmem>>, vector<1x1x8x1xf32>
    %93 = vector.shape_cast %92 : vector<1x1x8x1xf32> to vector<8x1xf32>
    %94 = arith.mulf %87, %87 : vector<8x1xf32>
    %95 = arith.mulf %89, %89 : vector<8x1xf32>
    %96 = arith.addf %94, %95 : vector<8x1xf32>
    %97 = arith.mulf %91, %91 : vector<8x1xf32>
    %98 = arith.addf %96, %97 : vector<8x1xf32>
    %99 = arith.mulf %93, %93 : vector<8x1xf32>
    %100 = arith.addf %98, %99 : vector<8x1xf32>
    %cst_88 = arith.constant 1.000000e-24 : f32
    %101 = vector.broadcast %cst_88 : f32 to vector<8x1xf32>
    %102 = arith.maximumf %100, %101 : vector<8x1xf32>
    %103 = math.rsqrt %102 : vector<8x1xf32>
    %104 = arith.mulf %87, %103 : vector<8x1xf32>
    %105 = arith.mulf %89, %103 : vector<8x1xf32>
    %106 = arith.mulf %91, %103 : vector<8x1xf32>
    %107 = arith.mulf %93, %103 : vector<8x1xf32>
    %108 = arith.mulf %79, %104 : vector<8x1xf32>
    %109 = arith.mulf %81, %105 : vector<8x1xf32>
    %110 = arith.addf %108, %109 : vector<8x1xf32>
    %111 = arith.mulf %83, %106 : vector<8x1xf32>
    %112 = arith.addf %110, %111 : vector<8x1xf32>
    %113 = arith.mulf %85, %107 : vector<8x1xf32>
    %114 = arith.addf %112, %113 : vector<8x1xf32>
    %115 = arith.mulf %31, %114 : vector<8x1xf32>
    %116 = arith.mulf %115, %104 : vector<8x1xf32>
    %117 = arith.subf %79, %116 : vector<8x1xf32>
    %118 = arith.mulf %115, %105 : vector<8x1xf32>
    %119 = arith.subf %81, %118 : vector<8x1xf32>
    %120 = arith.mulf %115, %106 : vector<8x1xf32>
    %121 = arith.subf %83, %120 : vector<8x1xf32>
    %122 = arith.mulf %115, %107 : vector<8x1xf32>
    %123 = arith.subf %85, %122 : vector<8x1xf32>
    %c0_89 = arith.constant 0 : index
    %c20 = arith.constant 20 : index
    %c0_90 = arith.constant 0 : index
    %c0_91 = arith.constant 0 : index
    %124 = vector.load %arg4[%c0_89, %c20, %c0_90, %c0_91] : memref<1x32x8x1xf32, #tpu.memory_space<vmem>>, vector<1x1x8x1xf32>
    %125 = vector.shape_cast %124 : vector<1x1x8x1xf32> to vector<8x1xf32>
    %c0_92 = arith.constant 0 : index
    %c21 = arith.constant 21 : index
    %c0_93 = arith.constant 0 : index
    %c0_94 = arith.constant 0 : index
    %126 = vector.load %arg4[%c0_92, %c21, %c0_93, %c0_94] : memref<1x32x8x1xf32, #tpu.memory_space<vmem>>, vector<1x1x8x1xf32>
    %127 = vector.shape_cast %126 : vector<1x1x8x1xf32> to vector<8x1xf32>
    %c0_95 = arith.constant 0 : index
    %c22 = arith.constant 22 : index
    %c0_96 = arith.constant 0 : index
    %c0_97 = arith.constant 0 : index
    %128 = vector.load %arg4[%c0_95, %c22, %c0_96, %c0_97] : memref<1x32x8x1xf32, #tpu.memory_space<vmem>>, vector<1x1x8x1xf32>
    %129 = vector.shape_cast %128 : vector<1x1x8x1xf32> to vector<8x1xf32>
    %c0_98 = arith.constant 0 : index
    %c23 = arith.constant 23 : index
    %c0_99 = arith.constant 0 : index
    %c0_100 = arith.constant 0 : index
    %130 = vector.load %arg4[%c0_98, %c23, %c0_99, %c0_100] : memref<1x32x8x1xf32, #tpu.memory_space<vmem>>, vector<1x1x8x1xf32>
    %131 = vector.shape_cast %130 : vector<1x1x8x1xf32> to vector<8x1xf32>
    %132 = arith.mulf %125, %125 : vector<8x1xf32>
    %133 = arith.mulf %127, %127 : vector<8x1xf32>
    %134 = arith.addf %132, %133 : vector<8x1xf32>
    %135 = arith.mulf %129, %129 : vector<8x1xf32>
    %136 = arith.addf %134, %135 : vector<8x1xf32>
    %137 = arith.mulf %131, %131 : vector<8x1xf32>
    %138 = arith.addf %136, %137 : vector<8x1xf32>
    %cst_101 = arith.constant 1.000000e-24 : f32
    %139 = vector.broadcast %cst_101 : f32 to vector<8x1xf32>
    %140 = arith.maximumf %138, %139 : vector<8x1xf32>
    %141 = math.rsqrt %140 : vector<8x1xf32>
    %142 = arith.mulf %125, %141 : vector<8x1xf32>
    %143 = arith.mulf %127, %141 : vector<8x1xf32>
    %144 = arith.mulf %129, %141 : vector<8x1xf32>
    %145 = arith.mulf %131, %141 : vector<8x1xf32>
    %146 = arith.mulf %117, %142 : vector<8x1xf32>
    %147 = arith.mulf %119, %143 : vector<8x1xf32>
    %148 = arith.addf %146, %147 : vector<8x1xf32>
    %149 = arith.mulf %121, %144 : vector<8x1xf32>
    %150 = arith.addf %148, %149 : vector<8x1xf32>
    %151 = arith.mulf %123, %145 : vector<8x1xf32>
    %152 = arith.addf %150, %151 : vector<8x1xf32>
    %cst_102 = arith.constant 2.000000e+00 : f32
    %153 = vector.broadcast %cst_102 : f32 to vector<8x1xf32>
    %154 = arith.mulf %153, %152 : vector<8x1xf32>
    %155 = arith.mulf %154, %142 : vector<8x1xf32>
    %156 = arith.subf %117, %155 : vector<8x1xf32>
    %157 = arith.mulf %154, %143 : vector<8x1xf32>
    %158 = arith.subf %119, %157 : vector<8x1xf32>
    %159 = arith.mulf %154, %144 : vector<8x1xf32>
    %160 = arith.subf %121, %159 : vector<8x1xf32>
    %161 = arith.mulf %154, %145 : vector<8x1xf32>
    %162 = arith.subf %123, %161 : vector<8x1xf32>
    %c0_103 = arith.constant 0 : index
    %c16 = arith.constant 16 : index
    %c0_104 = arith.constant 0 : index
    %c0_105 = arith.constant 0 : index
    %163 = vector.load %arg4[%c0_103, %c16, %c0_104, %c0_105] : memref<1x32x8x1xf32, #tpu.memory_space<vmem>>, vector<1x1x8x1xf32>
    %164 = vector.shape_cast %163 : vector<1x1x8x1xf32> to vector<8x1xf32>
    %c0_106 = arith.constant 0 : index
    %c17 = arith.constant 17 : index
    %c0_107 = arith.constant 0 : index
    %c0_108 = arith.constant 0 : index
    %165 = vector.load %arg4[%c0_106, %c17, %c0_107, %c0_108] : memref<1x32x8x1xf32, #tpu.memory_space<vmem>>, vector<1x1x8x1xf32>
    %166 = vector.shape_cast %165 : vector<1x1x8x1xf32> to vector<8x1xf32>
    %c0_109 = arith.constant 0 : index
    %c18 = arith.constant 18 : index
    %c0_110 = arith.constant 0 : index
    %c0_111 = arith.constant 0 : index
    %167 = vector.load %arg4[%c0_109, %c18, %c0_110, %c0_111] : memref<1x32x8x1xf32, #tpu.memory_space<vmem>>, vector<1x1x8x1xf32>
    %168 = vector.shape_cast %167 : vector<1x1x8x1xf32> to vector<8x1xf32>
    %c0_112 = arith.constant 0 : index
    %c19 = arith.constant 19 : index
    %c0_113 = arith.constant 0 : index
    %c0_114 = arith.constant 0 : index
    %169 = vector.load %arg4[%c0_112, %c19, %c0_113, %c0_114] : memref<1x32x8x1xf32, #tpu.memory_space<vmem>>, vector<1x1x8x1xf32>
    %170 = vector.shape_cast %169 : vector<1x1x8x1xf32> to vector<8x1xf32>
    %171 = arith.mulf %164, %164 : vector<8x1xf32>
    %172 = arith.mulf %166, %166 : vector<8x1xf32>
    %173 = arith.addf %171, %172 : vector<8x1xf32>
    %174 = arith.mulf %168, %168 : vector<8x1xf32>
    %175 = arith.addf %173, %174 : vector<8x1xf32>
    %176 = arith.mulf %170, %170 : vector<8x1xf32>
    %177 = arith.addf %175, %176 : vector<8x1xf32>
    %cst_115 = arith.constant 1.000000e-24 : f32
    %178 = vector.broadcast %cst_115 : f32 to vector<8x1xf32>
    %179 = arith.maximumf %177, %178 : vector<8x1xf32>
    %180 = math.rsqrt %179 : vector<8x1xf32>
    %181 = arith.mulf %164, %180 : vector<8x1xf32>
    %182 = arith.mulf %166, %180 : vector<8x1xf32>
    %183 = arith.mulf %168, %180 : vector<8x1xf32>
    %184 = arith.mulf %170, %180 : vector<8x1xf32>
    %185 = arith.mulf %156, %181 : vector<8x1xf32>
    %186 = arith.mulf %158, %182 : vector<8x1xf32>
    %187 = arith.addf %185, %186 : vector<8x1xf32>
    %188 = arith.mulf %160, %183 : vector<8x1xf32>
    %189 = arith.addf %187, %188 : vector<8x1xf32>
    %190 = arith.mulf %162, %184 : vector<8x1xf32>
    %191 = arith.addf %189, %190 : vector<8x1xf32>
    %cst_116 = arith.constant 2.000000e+00 : f32
    %192 = vector.broadcast %cst_116 : f32 to vector<8x1xf32>
    %193 = arith.mulf %192, %191 : vector<8x1xf32>
    %194 = arith.mulf %193, %181 : vector<8x1xf32>
    %195 = arith.subf %156, %194 : vector<8x1xf32>
    %196 = arith.mulf %193, %182 : vector<8x1xf32>
    %197 = arith.subf %158, %196 : vector<8x1xf32>
    %198 = arith.mulf %193, %183 : vector<8x1xf32>
    %199 = arith.subf %160, %198 : vector<8x1xf32>
    %200 = arith.mulf %193, %184 : vector<8x1xf32>
    %201 = arith.subf %162, %200 : vector<8x1xf32>
    %c0_117 = arith.constant 0 : index
    %c12 = arith.constant 12 : index
    %c0_118 = arith.constant 0 : index
    %c0_119 = arith.constant 0 : index
    %202 = vector.load %arg4[%c0_117, %c12, %c0_118, %c0_119] : memref<1x32x8x1xf32, #tpu.memory_space<vmem>>, vector<1x1x8x1xf32>
    %203 = vector.shape_cast %202 : vector<1x1x8x1xf32> to vector<8x1xf32>
    %c0_120 = arith.constant 0 : index
    %c13 = arith.constant 13 : index
    %c0_121 = arith.constant 0 : index
    %c0_122 = arith.constant 0 : index
    %204 = vector.load %arg4[%c0_120, %c13, %c0_121, %c0_122] : memref<1x32x8x1xf32, #tpu.memory_space<vmem>>, vector<1x1x8x1xf32>
    %205 = vector.shape_cast %204 : vector<1x1x8x1xf32> to vector<8x1xf32>
    %c0_123 = arith.constant 0 : index
    %c14 = arith.constant 14 : index
    %c0_124 = arith.constant 0 : index
    %c0_125 = arith.constant 0 : index
    %206 = vector.load %arg4[%c0_123, %c14, %c0_124, %c0_125] : memref<1x32x8x1xf32, #tpu.memory_space<vmem>>, vector<1x1x8x1xf32>
    %207 = vector.shape_cast %206 : vector<1x1x8x1xf32> to vector<8x1xf32>
    %c0_126 = arith.constant 0 : index
    %c15 = arith.constant 15 : index
    %c0_127 = arith.constant 0 : index
    %c0_128 = arith.constant 0 : index
    %208 = vector.load %arg4[%c0_126, %c15, %c0_127, %c0_128] : memref<1x32x8x1xf32, #tpu.memory_space<vmem>>, vector<1x1x8x1xf32>
    %209 = vector.shape_cast %208 : vector<1x1x8x1xf32> to vector<8x1xf32>
    %210 = arith.mulf %203, %203 : vector<8x1xf32>
    %211 = arith.mulf %205, %205 : vector<8x1xf32>
    %212 = arith.addf %210, %211 : vector<8x1xf32>
    %213 = arith.mulf %207, %207 : vector<8x1xf32>
    %214 = arith.addf %212, %213 : vector<8x1xf32>
    %215 = arith.mulf %209, %209 : vector<8x1xf32>
    %216 = arith.addf %214, %215 : vector<8x1xf32>
    %cst_129 = arith.constant 1.000000e-24 : f32
    %217 = vector.broadcast %cst_129 : f32 to vector<8x1xf32>
    %218 = arith.maximumf %216, %217 : vector<8x1xf32>
    %219 = math.rsqrt %218 : vector<8x1xf32>
    %220 = arith.mulf %203, %219 : vector<8x1xf32>
    %221 = arith.mulf %205, %219 : vector<8x1xf32>
    %222 = arith.mulf %207, %219 : vector<8x1xf32>
    %223 = arith.mulf %209, %219 : vector<8x1xf32>
    %224 = arith.mulf %195, %220 : vector<8x1xf32>
    %225 = arith.mulf %197, %221 : vector<8x1xf32>
    %226 = arith.addf %224, %225 : vector<8x1xf32>
    %227 = arith.mulf %199, %222 : vector<8x1xf32>
    %228 = arith.addf %226, %227 : vector<8x1xf32>
    %229 = arith.mulf %201, %223 : vector<8x1xf32>
    %230 = arith.addf %228, %229 : vector<8x1xf32>
    %cst_130 = arith.constant 2.000000e+00 : f32
    %231 = vector.broadcast %cst_130 : f32 to vector<8x1xf32>
    %232 = arith.mulf %231, %230 : vector<8x1xf32>
    %233 = arith.mulf %232, %220 : vector<8x1xf32>
    %234 = arith.subf %195, %233 : vector<8x1xf32>
    %235 = arith.mulf %232, %221 : vector<8x1xf32>
    %236 = arith.subf %197, %235 : vector<8x1xf32>
    %237 = arith.mulf %232, %222 : vector<8x1xf32>
    %238 = arith.subf %199, %237 : vector<8x1xf32>
    %239 = arith.mulf %232, %223 : vector<8x1xf32>
    %240 = arith.subf %201, %239 : vector<8x1xf32>
    %c0_131 = arith.constant 0 : index
    %c8 = arith.constant 8 : index
    %c0_132 = arith.constant 0 : index
    %c0_133 = arith.constant 0 : index
    %241 = vector.load %arg4[%c0_131, %c8, %c0_132, %c0_133] : memref<1x32x8x1xf32, #tpu.memory_space<vmem>>, vector<1x1x8x1xf32>
    %242 = vector.shape_cast %241 : vector<1x1x8x1xf32> to vector<8x1xf32>
    %c0_134 = arith.constant 0 : index
    %c9 = arith.constant 9 : index
    %c0_135 = arith.constant 0 : index
    %c0_136 = arith.constant 0 : index
    %243 = vector.load %arg4[%c0_134, %c9, %c0_135, %c0_136] : memref<1x32x8x1xf32, #tpu.memory_space<vmem>>, vector<1x1x8x1xf32>
    %244 = vector.shape_cast %243 : vector<1x1x8x1xf32> to vector<8x1xf32>
    %c0_137 = arith.constant 0 : index
    %c10 = arith.constant 10 : index
    %c0_138 = arith.constant 0 : index
    %c0_139 = arith.constant 0 : index
    %245 = vector.load %arg4[%c0_137, %c10, %c0_138, %c0_139] : memref<1x32x8x1xf32, #tpu.memory_space<vmem>>, vector<1x1x8x1xf32>
    %246 = vector.shape_cast %245 : vector<1x1x8x1xf32> to vector<8x1xf32>
    %c0_140 = arith.constant 0 : index
    %c11 = arith.constant 11 : index
    %c0_141 = arith.constant 0 : index
    %c0_142 = arith.constant 0 : index
    %247 = vector.load %arg4[%c0_140, %c11, %c0_141, %c0_142] : memref<1x32x8x1xf32, #tpu.memory_space<vmem>>, vector<1x1x8x1xf32>
    %248 = vector.shape_cast %247 : vector<1x1x8x1xf32> to vector<8x1xf32>
    %249 = arith.mulf %242, %242 : vector<8x1xf32>
    %250 = arith.mulf %244, %244 : vector<8x1xf32>
    %251 = arith.addf %249, %250 : vector<8x1xf32>
    %252 = arith.mulf %246, %246 : vector<8x1xf32>
    %253 = arith.addf %251, %252 : vector<8x1xf32>
    %254 = arith.mulf %248, %248 : vector<8x1xf32>
    %255 = arith.addf %253, %254 : vector<8x1xf32>
    %cst_143 = arith.constant 1.000000e-24 : f32
    %256 = vector.broadcast %cst_143 : f32 to vector<8x1xf32>
    %257 = arith.maximumf %255, %256 : vector<8x1xf32>
    %258 = math.rsqrt %257 : vector<8x1xf32>
    %259 = arith.mulf %242, %258 : vector<8x1xf32>
    %260 = arith.mulf %244, %258 : vector<8x1xf32>
    %261 = arith.mulf %246, %258 : vector<8x1xf32>
    %262 = arith.mulf %248, %258 : vector<8x1xf32>
    %263 = arith.mulf %234, %259 : vector<8x1xf32>
    %264 = arith.mulf %236, %260 : vector<8x1xf32>
    %265 = arith.addf %263, %264 : vector<8x1xf32>
    %266 = arith.mulf %238, %261 : vector<8x1xf32>
    %267 = arith.addf %265, %266 : vector<8x1xf32>
    %268 = arith.mulf %240, %262 : vector<8x1xf32>
    %269 = arith.addf %267, %268 : vector<8x1xf32>
    %cst_144 = arith.constant 2.000000e+00 : f32
    %270 = vector.broadcast %cst_144 : f32 to vector<8x1xf32>
    %271 = arith.mulf %270, %269 : vector<8x1xf32>
    %272 = arith.mulf %271, %259 : vector<8x1xf32>
    %273 = arith.subf %234, %272 : vector<8x1xf32>
    %274 = arith.mulf %271, %260 : vector<8x1xf32>
    %275 = arith.subf %236, %274 : vector<8x1xf32>
    %276 = arith.mulf %271, %261 : vector<8x1xf32>
    %277 = arith.subf %238, %276 : vector<8x1xf32>
    %278 = arith.mulf %271, %262 : vector<8x1xf32>
    %279 = arith.subf %240, %278 : vector<8x1xf32>
    %c0_145 = arith.constant 0 : index
    %c0_146 = arith.constant 0 : index
    %c0_147 = arith.constant 0 : index
    %c0_148 = arith.constant 0 : index
    %280 = vector.load %arg4[%c0_145, %c0_146, %c0_147, %c0_148] : memref<1x32x8x1xf32, #tpu.memory_space<vmem>>, vector<1x1x8x1xf32>
    %281 = vector.shape_cast %280 : vector<1x1x8x1xf32> to vector<8x1xf32>
    %c0_149 = arith.constant 0 : index
    %c1_150 = arith.constant 1 : index
    %c0_151 = arith.constant 0 : index
    %c0_152 = arith.constant 0 : index
    %282 = vector.load %arg4[%c0_149, %c1_150, %c0_151, %c0_152] : memref<1x32x8x1xf32, #tpu.memory_space<vmem>>, vector<1x1x8x1xf32>
    %283 = vector.shape_cast %282 : vector<1x1x8x1xf32> to vector<8x1xf32>
    %c0_153 = arith.constant 0 : index
    %c2_154 = arith.constant 2 : index
    %c0_155 = arith.constant 0 : index
    %c0_156 = arith.constant 0 : index
    %284 = vector.load %arg4[%c0_153, %c2_154, %c0_155, %c0_156] : memref<1x32x8x1xf32, #tpu.memory_space<vmem>>, vector<1x1x8x1xf32>
    %285 = vector.shape_cast %284 : vector<1x1x8x1xf32> to vector<8x1xf32>
    %c0_157 = arith.constant 0 : index
    %c3_158 = arith.constant 3 : index
    %c0_159 = arith.constant 0 : index
    %c0_160 = arith.constant 0 : index
    %286 = vector.load %arg4[%c0_157, %c3_158, %c0_159, %c0_160] : memref<1x32x8x1xf32, #tpu.memory_space<vmem>>, vector<1x1x8x1xf32>
    %287 = vector.shape_cast %286 : vector<1x1x8x1xf32> to vector<8x1xf32>
    %288 = arith.mulf %281, %281 : vector<8x1xf32>
    %289 = arith.mulf %283, %283 : vector<8x1xf32>
    %290 = arith.addf %288, %289 : vector<8x1xf32>
    %291 = arith.mulf %285, %285 : vector<8x1xf32>
    %292 = arith.addf %290, %291 : vector<8x1xf32>
    %293 = arith.mulf %287, %287 : vector<8x1xf32>
    %294 = arith.addf %292, %293 : vector<8x1xf32>
    %cst_161 = arith.constant 1.000000e-24 : f32
    %295 = vector.broadcast %cst_161 : f32 to vector<8x1xf32>
    %296 = arith.maximumf %294, %295 : vector<8x1xf32>
    %297 = math.rsqrt %296 : vector<8x1xf32>
    %298 = arith.mulf %281, %297 : vector<8x1xf32>
    %299 = arith.mulf %283, %297 : vector<8x1xf32>
    %300 = arith.mulf %285, %297 : vector<8x1xf32>
    %301 = arith.mulf %287, %297 : vector<8x1xf32>
    %302 = vector.broadcast %298 : vector<8x1xf32> to vector<8x128xf32>
    %303 = arith.mulf %9, %302 : vector<8x128xf32>
    %304 = vector.broadcast %299 : vector<8x1xf32> to vector<8x128xf32>
    %305 = arith.mulf %11, %304 : vector<8x128xf32>
    %306 = arith.addf %303, %305 : vector<8x128xf32>
    %307 = vector.broadcast %300 : vector<8x1xf32> to vector<8x128xf32>
    %308 = arith.mulf %13, %307 : vector<8x128xf32>
    %309 = arith.addf %306, %308 : vector<8x128xf32>
    %310 = vector.broadcast %301 : vector<8x1xf32> to vector<8x128xf32>
    %311 = arith.mulf %15, %310 : vector<8x128xf32>
    %312 = arith.addf %309, %311 : vector<8x128xf32>
    %313 = vector.broadcast %39 : vector<8x1xf32> to vector<8x128xf32>
    %314 = arith.mulf %313, %312 : vector<8x128xf32>
    %315 = vector.broadcast %298 : vector<8x1xf32> to vector<8x128xf32>
    %316 = arith.mulf %314, %315 : vector<8x128xf32>
    %317 = arith.subf %9, %316 : vector<8x128xf32>
    %318 = vector.broadcast %299 : vector<8x1xf32> to vector<8x128xf32>
    %319 = arith.mulf %314, %318 : vector<8x128xf32>
    %320 = arith.subf %11, %319 : vector<8x128xf32>
    %321 = vector.broadcast %300 : vector<8x1xf32> to vector<8x128xf32>
    %322 = arith.mulf %314, %321 : vector<8x128xf32>
    %323 = arith.subf %13, %322 : vector<8x128xf32>
    %324 = vector.broadcast %301 : vector<8x1xf32> to vector<8x128xf32>
    %325 = arith.mulf %314, %324 : vector<8x128xf32>
    %326 = arith.subf %15, %325 : vector<8x128xf32>
    %c0_162 = arith.constant 0 : index
    %c4 = arith.constant 4 : index
    %c0_163 = arith.constant 0 : index
    %c0_164 = arith.constant 0 : index
    %327 = vector.load %arg4[%c0_162, %c4, %c0_163, %c0_164] : memref<1x32x8x1xf32, #tpu.memory_space<vmem>>, vector<1x1x8x1xf32>
    %328 = vector.shape_cast %327 : vector<1x1x8x1xf32> to vector<8x1xf32>
    %c0_165 = arith.constant 0 : index
    %c5 = arith.constant 5 : index
    %c0_166 = arith.constant 0 : index
    %c0_167 = arith.constant 0 : index
    %329 = vector.load %arg4[%c0_165, %c5, %c0_166, %c0_167] : memref<1x32x8x1xf32, #tpu.memory_space<vmem>>, vector<1x1x8x1xf32>
    %330 = vector.shape_cast %329 : vector<1x1x8x1xf32> to vector<8x1xf32>
    %c0_168 = arith.constant 0 : index
    %c6 = arith.constant 6 : index
    %c0_169 = arith.constant 0 : index
    %c0_170 = arith.constant 0 : index
    %331 = vector.load %arg4[%c0_168, %c6, %c0_169, %c0_170] : memref<1x32x8x1xf32, #tpu.memory_space<vmem>>, vector<1x1x8x1xf32>
    %332 = vector.shape_cast %331 : vector<1x1x8x1xf32> to vector<8x1xf32>
    %c0_171 = arith.constant 0 : index
    %c7 = arith.constant 7 : index
    %c0_172 = arith.constant 0 : index
    %c0_173 = arith.constant 0 : index
    %333 = vector.load %arg4[%c0_171, %c7, %c0_172, %c0_173] : memref<1x32x8x1xf32, #tpu.memory_space<vmem>>, vector<1x1x8x1xf32>
    %334 = vector.shape_cast %333 : vector<1x1x8x1xf32> to vector<8x1xf32>
    %335 = arith.mulf %328, %328 : vector<8x1xf32>
    %336 = arith.mulf %330, %330 : vector<8x1xf32>
    %337 = arith.addf %335, %336 : vector<8x1xf32>
    %338 = arith.mulf %332, %332 : vector<8x1xf32>
    %339 = arith.addf %337, %338 : vector<8x1xf32>
    %340 = arith.mulf %334, %334 : vector<8x1xf32>
    %341 = arith.addf %339, %340 : vector<8x1xf32>
    %cst_174 = arith.constant 1.000000e-24 : f32
    %342 = vector.broadcast %cst_174 : f32 to vector<8x1xf32>
    %343 = arith.maximumf %341, %342 : vector<8x1xf32>
    %344 = math.rsqrt %343 : vector<8x1xf32>
    %345 = arith.mulf %328, %344 : vector<8x1xf32>
    %346 = arith.mulf %330, %344 : vector<8x1xf32>
    %347 = arith.mulf %332, %344 : vector<8x1xf32>
    %348 = arith.mulf %334, %344 : vector<8x1xf32>
    %349 = vector.broadcast %345 : vector<8x1xf32> to vector<8x128xf32>
    %350 = arith.mulf %317, %349 : vector<8x128xf32>
    %351 = vector.broadcast %346 : vector<8x1xf32> to vector<8x128xf32>
    %352 = arith.mulf %320, %351 : vector<8x128xf32>
    %353 = arith.addf %350, %352 : vector<8x128xf32>
    %354 = vector.broadcast %347 : vector<8x1xf32> to vector<8x128xf32>
    %355 = arith.mulf %323, %354 : vector<8x128xf32>
    %356 = arith.addf %353, %355 : vector<8x128xf32>
    %357 = vector.broadcast %348 : vector<8x1xf32> to vector<8x128xf32>
    %358 = arith.mulf %326, %357 : vector<8x128xf32>
    %359 = arith.addf %356, %358 : vector<8x128xf32>
    %360 = vector.broadcast %47 : vector<8x1xf32> to vector<8x128xf32>
    %361 = arith.mulf %360, %359 : vector<8x128xf32>
    %362 = vector.broadcast %345 : vector<8x1xf32> to vector<8x128xf32>
    %363 = arith.mulf %361, %362 : vector<8x128xf32>
    %364 = arith.subf %317, %363 : vector<8x128xf32>
    %365 = vector.broadcast %346 : vector<8x1xf32> to vector<8x128xf32>
    %366 = arith.mulf %361, %365 : vector<8x128xf32>
    %367 = arith.subf %320, %366 : vector<8x128xf32>
    %368 = vector.broadcast %347 : vector<8x1xf32> to vector<8x128xf32>
    %369 = arith.mulf %361, %368 : vector<8x128xf32>
    %370 = arith.subf %323, %369 : vector<8x128xf32>
    %371 = vector.broadcast %348 : vector<8x1xf32> to vector<8x128xf32>
    %372 = arith.mulf %361, %371 : vector<8x128xf32>
    %373 = arith.subf %326, %372 : vector<8x128xf32>
    %374 = vector.broadcast %273 : vector<8x1xf32> to vector<8x128xf32>
    %375 = arith.subf %374, %364 : vector<8x128xf32>
    %376 = arith.mulf %375, %375 : vector<8x128xf32>
    %377 = vector.broadcast %275 : vector<8x1xf32> to vector<8x128xf32>
    %378 = arith.subf %377, %367 : vector<8x128xf32>
    %379 = arith.mulf %378, %378 : vector<8x128xf32>
    %380 = arith.addf %376, %379 : vector<8x128xf32>
    %381 = vector.broadcast %277 : vector<8x1xf32> to vector<8x128xf32>
    %382 = arith.subf %381, %370 : vector<8x128xf32>
    %383 = arith.mulf %382, %382 : vector<8x128xf32>
    %384 = arith.addf %380, %383 : vector<8x128xf32>
    %385 = vector.broadcast %279 : vector<8x1xf32> to vector<8x128xf32>
    %386 = arith.subf %385, %373 : vector<8x128xf32>
    %387 = arith.mulf %386, %386 : vector<8x128xf32>
    %388 = arith.addf %384, %387 : vector<8x128xf32>
    %389 = math.sqrt %388 : vector<8x128xf32>
    %cst_175 = arith.constant dense<0.000000e+00> : vector<128xf32>
    %390 = vector.multi_reduction <add>, %389, %cst_175 [0] : vector<8x128xf32> to vector<128xf32>
    %391 = vector.shape_cast %390 : vector<128xf32> to vector<1x128xf32>
    %cst_176 = arith.constant 6.000000e+00 : f32
    %392 = vector.broadcast %cst_176 : f32 to vector<1x128xf32>
    %393 = arith.subf %392, %391 : vector<1x128xf32>
    %c0_177 = arith.constant 0 : index
    %c0_178 = arith.constant 0 : index
    %c0_179 = arith.constant 0 : index
    %394 = vector.load %arg9[%c0_177, %c0_178, %c0_179] : memref<1x1x128xf32, #tpu.memory_space<vmem>>, vector<1x1x128xf32>
    %395 = vector.shape_cast %394 : vector<1x1x128xf32> to vector<1x128xf32>
    %396 = vector.shape_cast %393 : vector<1x128xf32> to vector<1x1x128xf32>
    tpu.vector_store %arg9[%c0_177, %c0_178, %c0_179], %396 {strides = array<i32>} : memref<1x1x128xf32, #tpu.memory_space<vmem>>, vector<1x1x128xf32>,
    return
  }
  func.func @transform_0(%arg0: i32, %arg1: i32) -> (i32, i32, i32, i32) {
    %c0_i32 = arith.constant 0 : i32
    %c0_i32_0 = arith.constant 0 : i32
    %c0_i32_1 = arith.constant 0 : i32
    %c0_i32_2 = arith.constant 0 : i32
    return %arg0, %c0_i32, %c0_i32_0, %c0_i32_1 : i32, i32, i32, i32
  }
  func.func @transform_1(%arg0: i32, %arg1: i32) -> (i32, i32, i32, i32) {
    %c0_i32 = arith.constant 0 : i32
    %c0_i32_0 = arith.constant 0 : i32
    %c0_i32_1 = arith.constant 0 : i32
    return %arg0, %c0_i32, %c0_i32_0, %arg1 : i32, i32, i32, i32
  }
  func.func @transform_2(%arg0: i32, %arg1: i32) -> (i32, i32, i32, i32) {
    %c0_i32 = arith.constant 0 : i32
    %c0_i32_0 = arith.constant 0 : i32
    %c0_i32_1 = arith.constant 0 : i32
    %c0_i32_2 = arith.constant 0 : i32
    return %arg0, %c0_i32, %c0_i32_0, %c0_i32_1 : i32, i32, i32, i32
  }
  func.func @transform_3(%arg0: i32, %arg1: i32) -> (i32, i32, i32, i32) {
    %c0_i32 = arith.constant 0 : i32
    %c0_i32_0 = arith.constant 0 : i32
    %c0_i32_1 = arith.constant 0 : i32
    %c0_i32_2 = arith.constant 0 : i32
    return %arg0, %c0_i32, %c0_i32_0, %c0_i32_1 : i32, i32, i32, i32
  }
  func.func @transform_4(%arg0: i32, %arg1: i32) -> (i32, i32, i32, i32) {
    %c0_i32 = arith.constant 0 : i32
    %c0_i32_0 = arith.constant 0 : i32
    %c0_i32_1 = arith.constant 0 : i32
    %c0_i32_2 = arith.constant 0 : i32
    return %arg0, %c0_i32, %c0_i32_0, %c0_i32_1 : i32, i32, i32, i32
  }
  func.func @transform_5(%arg0: i32, %arg1: i32) -> (i32, i32, i32, i32) {
    %c0_i32 = arith.constant 0 : i32
    %c0_i32_0 = arith.constant 0 : i32
    %c0_i32_1 = arith.constant 0 : i32
    %c0_i32_2 = arith.constant 0 : i32
    return %arg0, %c0_i32, %c0_i32_0, %c0_i32_1 : i32, i32, i32, i32
  }
  func.func @transform_6(%arg0: i32, %arg1: i32) -> (i32, i32, i32, i32) {
    %c0_i32 = arith.constant 0 : i32
    %c0_i32_0 = arith.constant 0 : i32
    %c0_i32_1 = arith.constant 0 : i32
    %c0_i32_2 = arith.constant 0 : i32
    return %arg0, %c0_i32, %c0_i32_0, %c0_i32_1 : i32, i32, i32, i32
  }
  func.func @transform_7(%arg0: i32, %arg1: i32) -> (i32, i32, i32) {
    %c0_i32 = arith.constant 0 : i32
    %c0_i32_0 = arith.constant 0 : i32
    return %arg0, %c0_i32, %arg1 : i32, i32, i32
  }
}

</mosaic_0001>

<bundles_post_ra>
// kernel: house_tail_batch.1
= control target key start
LH: loop header
LB: loop body
LE: loop exit
PB: predicated region body
PF: predicated region fallthrough
CT: control target
= control target key end

     0   :  { %12 = vsyncpa [#allocation3], 0  ;;  %s1614_s0 = inlined_call_operand.vmem [shape: f32[2,4,8,1], index: 0, kind: input, shape index: {}]   ;;  %s1615_s1 = inlined_call_operand.vmem [shape: f32[2,4,8,128], index: 1, kind: input, shape index: {}]   ;;  %s1616_s2 = inlined_call_operand.vmem [shape: f32[2,32,8,1], index: 2, kind: input, shape index: {}]   ;;  %s1617_s3 = inlined_call_operand.vmem [shape: f32[2,2,8,1], index: 3, kind: input, shape index: {}]   ;;  %s1618_s4 = inlined_call_operand.vmem [shape: f32[2,2,8,1], index: 4, kind: input, shape index: {}]   ;;  %s1619_s5 = inlined_call_operand.vmem [shape: f32[2,2,8,1], index: 5, kind: input, shape index: {}]   ;;  %s1620_s6 = inlined_call_operand.vmem [shape: f32[2,2,8,1], index: 6, kind: input, shape index: {}]   ;;  %s1621_s7 = inlined_call_operand.hbm [shape: f32[2,1,128], index: 7, kind: output, shape index: {}]  }
   0x1   :  { %14 = vsyncpa [#allocation3 + $0x1], 0  ;;  %s1274_s24 = smov 0   ;;  %s1276_s25 = smov 0  }
   0x2   :  { %s1278_s26 = smov 0   ;;  %s1280_s27 = smov 0  }
   0x3   :  { %s1282_s28 = smov 0   ;;  %s1284_s29 = smov 0  }
   0x4 LB: > { %s1006_s30 = sadd.s32 4294967295, %s1230_s29   ;;  %s1007_s8 = sadd.s32 4294967294, %s1230_s29   ;;  %s1230_s29 = sphi %s1284_s29, %s20_s29   ;;  %s1226_s28 = sphi %s1282_s28, %s1628_s28   ;;  %s1222_s27 = sphi %s1280_s27, %s1627_s27   ;;  %s1218_s26 = sphi %s1278_s26, %s1626_s26   ;;  %s1214_s25 = sphi %s1276_s25, %s1625_s25   ;;  %s1210_s24 = sphi %s1274_s24, %s1624_s24  }
   0x5   : > { %s32_s9 = sadd.s32 1, %s1226_s28  ;;  %s225_s10 = sadd.s32 1, %s1218_s26 }
   0x6   : > { %p34_p0 = scmp.ge.s32.totalorder %s32_s9, 2  ;;  %p235_p1 = scmp.ne.s32.totalorder %s1218_s26, %s1214_s25 }
   0x7   : > { %p236_p2 = scmp.eq.s32.totalorder %s1006_s30, 1  ;;  %p241_p3 = scmp.ne.s32.totalorder %s1214_s25, %s1210_s24 }
   0x8   : > { %s1630_s9 = smov (%p34_p0, %s32_s9), 0  ;;  %p242_p5 = scmp.eq.s32.totalorder %s1007_s8, 1 }
   0x9   : > { %p1314_p4 = por %p236_p2, %p235_p1  ;;  %s220_s12 = ssub.s32 %s1226_s28, %s1630_s9 }
   0xa   : > { %p1010_p6 = scmp.ge.s32.totalorder %s1230_s29, 1  ;;  %p223_p7 = scmp.eq.s32.totalorder %s220_s12, 0 }
   0xb   : > { %p1321_p8 = por %p242_p5, %p241_p3  ;;  %p319_p9 = scmp.lt.s32.totalorder %s1230_s29, 3 }
   0xc   : > { %s1327_s14 = scalar_select %p223_p7, %s1218_s26, %s225_s10  }
   0xd   : > { %p320_p10 = pnand %p1010_p6, %p319_p9 }
   0xe   : > { %p383_p11 = scmp.lt.s32.totalorder (!%p320_p10), %s1222_s27, 1  ;;  %v1232_v0 = vmov (!%p320_p10), 0  }
   0xf   : > { %323 = sbr.rel (%p320_p10) target bundleno = 320 (0x140), region = 48  ;;  %1132 = vset.pattern.permute.xlu0 (!%p320_p10), %v1232_v0  ;;  %1133 = vset.pattern.permute.xlu1 (!%p320_p10), %v1232_v0 }
  0x16   : > { %s1331_s15 = scalar_select %p383_p11, %s1222_s27, 1 }
  0x18   : > { %s1071_s16 = sshll.u32 %s1331_s15, 8  ;;  %s1411_s20 = sshll.u32 %s1331_s15, 4 }
  0x19   : > { %s1337_s19 = scalar_lea.vmem %s1616_s2, %s1071_s16  ;;  %s1420_s23 = scalar_lea.vmem %s1620_s6, %s1411_s20 }
  0x1a   : > { %v1340_v1 = vld [vmem:[%s1337_s19] sm:$0xff]  ;;  %v1343_v2 = vld [vmem:[%s1337_s19 + $0x8] sm:$0xff]  ;;  %v1060_v3 = vld [vmem:[%s1337_s19 + $0x10] sm:$0xff]  ;;  %s1429_s10 = scalar_lea.vmem %s1619_s5, %s1411_s20  ;;  %s1441_s17 = scalar_lea.vmem %s1618_s4, %s1411_s20 }
  0x1b   : > { %v1347_v4 = vld [vmem:[%s1337_s19 + $0x18] sm:$0xff]  ;;  %v688_v5 = vmul.f32 %v1340_v1, %v1340_v1  ;;  %v689_v6 = vmul.f32 %v1343_v2, %v1343_v2  ;;  %v691_v7 = vmul.f32 %v1060_v3, %v1060_v3  ;;  %v1356_v10 = vld [vmem:[%s1337_s19 + $0x20] sm:$0xff]  ;;  %v1359_v11 = vld [vmem:[%s1337_s19 + $0x28] sm:$0xff]  ;;  %s1069_s18 = sshll.u32 %s1331_s15, 5  ;;  %s1462_s30 = scalar_lea.vmem %s1617_s3, %s1411_s20 }
  0x1c   : > { %v693_v9 = vmul.f32 %v1347_v4, %v1347_v4  ;;  %v1362_v12 = vld [vmem:[%s1337_s19 + $0x30] sm:$0xff]  ;;  %v1365_v13 = vld [vmem:[%s1337_s19 + $0x38] sm:$0xff]  ;;  %v750_v14 = vmul.f32 %v1356_v10, %v1356_v10  ;;  %v751_v15 = vmul.f32 %v1359_v11, %v1359_v11  ;;  %v1376_v20 = vld [vmem:[%s1337_s19 + $0xe0] sm:$0xff]  ;;  %s387_s16 = scalar_lea.vmem %s1614_s0, %s1069_s18  ;;  %s381_s15 = sand.u32 1, %s1214_s25  }
  0x1d   : > { %v690_v8 = vadd.f32 %v689_v6, %v688_v5  ;;  %v753_v17 = vmul.f32 %v1362_v12, %v1362_v12  ;;  %v755_v19 = vmul.f32 %v1365_v13, %v1365_v13  ;;  %v1379_v22 = vld [vmem:[%s1337_s19 + $0xe8] sm:$0xff]  ;;  %v1382_v23 = vld [vmem:[%s1337_s19 + $0xf0] sm:$0xff]  ;;  %v1385_v24 = vld [vmem:[%s1337_s19 + $0xf8] sm:$0xff]  ;;  %v467_v25 = vmul.f32 %v1376_v20, %v1376_v20  ;;  %s851_s8 = scalar_lea.sflag [#allocation3], %s381_s15 }
  0x1e   : > { %v752_v18 = vadd.f32 %v751_v15, %v750_v14  ;;  %v468_v27 = vmul.f32 %v1379_v22, %v1379_v22  ;;  %v1392_v28 = vld [vmem:[%s1337_s19 + $0xc0] sm:$0xff]  ;;  %v1395_v29 = vld [vmem:[%s1337_s19 + $0xc8] sm:$0xff]  ;;  %v1398_v30 = vld [vmem:[%s1337_s19 + $0xd0] sm:$0xff]  ;;  %v470_v32 = vmul.f32 %v1382_v23, %v1382_v23  ;;  %v472_v36 = vmul.f32 %v1385_v24, %v1385_v24 }
  0x1f   : > { %v692_v16 = vadd.f32 %v691_v7, %v690_v8  ;;  %v504_v33 = vmul.f32 %v1392_v28, %v1392_v28  ;;  %v505_v37 = vmul.f32 %v1395_v29, %v1395_v29  ;;  %v507_v38 = vmul.f32 %v1398_v30, %v1398_v30  ;;  %v1414_v41 = vld [vmem:[%s1337_s19 + $0xd8] sm:$0xff]  ;;  %v448_v46 = vld [vmem:[%s1420_s23] sm:$0xff]  ;;  %v1435_v49 = vld [vmem:[%s1337_s19 + $0xa8] sm:$0xff] }
  0x20   : > { %v754_v26 = vadd.f32 %v753_v17, %v752_v18  ;;  %v469_v35 = vadd.f32 %v468_v27, %v467_v25  ;;  %v509_v45 = vmul.f32 %v1414_v41, %v1414_v41  ;;  %v1432_v48 = vld [vmem:[%s1337_s19 + $0xa0] sm:$0xff]  ;;  %v449_v50 = vand.u32 2147483647, %v448_v46  ;;  %v1445_v53 = vld [vmem:[%s1337_s19 + $0xb0] sm:$0xff]  ;;  %v1471_v6 = vld [vmem:[%s1337_s19 + $0xb8] sm:$0xff] }
  0x21   : > { %v694_v21 = vadd.f32 %v693_v9, %v692_v16  ;;  %v506_v42 = vadd.f32 %v505_v37, %v504_v33  ;;  %v447_v52 = vld [vmem:[%s1429_s10] sm:$0xff]  ;;  %v541_v54 = vmul.f32 %v1432_v48, %v1432_v48  ;;  %v542_v55 = vmul.f32 %v1435_v49, %v1435_v49  ;;  %v1033_v8 = vld [vmem:[%s1429_s10 + $0x8] sm:$0xff]  ;;  %v1026_v18 = vld [vmem:[%s387_s16 + $0x10] sm:$0xff]  ;;  %s1066_s10 = sshll.u32 %s1222_s27, 4  ;;  %s1233_s27 = smov [#allocation2]  }
  0x22   : > { %v756_v34 = vadd.f32 %v755_v19, %v754_v26  ;;  %v471_v40 = vadd.f32 %v470_v32, %v469_v35  ;;  %v436_v59 = vld [vmem:[%s1441_s17] sm:$0xff]  ;;  %v450_v60 = vmul.f32 %v449_v50, %v447_v52  ;;  %v544_v62 = vmul.f32 %v1445_v53, %v1445_v53  ;;  %v1025_v17 = vld [vmem:[%s387_s16 + $0x8] sm:$0xff]  ;;  %v1027_v33 = vld [vmem:[%s387_s16 + $0x18] sm:$0xff] }
  0x23   : > { %v695_v31 = vmax.f32 %v694_v21, 1e-24  ;;  %v508_v44 = vadd.f32 %v507_v38, %v506_v42  ;;  %v437_v7 = vand.u32 2147483647, %v436_v59  ;;  %v421_v16 = vld [vmem:[%s387_s16] sm:$0xff]  ;;  %v546_v21 = vmul.f32 %v1471_v6, %v1471_v6  ;;  %v1486_v38 = vld [vmem:[%s1337_s19 + $0x88] sm:$0xff] }
  0x24   : > { %v757_v39 = vmax.f32 %v756_v34, 1e-24  ;;  %v473_v43 = vadd.f32 %v472_v36, %v471_v40  ;;  %v451_v14 = vmin.f32 %v450_v60, 0.5  ;;  %v1483_v37 = vld [vmem:[%s1337_s19 + $0x80] sm:$0xff]  ;;  %v579_v42 = vmul.f32 %v1486_v38, %v1486_v38  ;;  %v1032_v46 = vld [vmem:[%s1441_s17 + $0x8] sm:$0xff]  ;;  %s382_s17 = scalar_lea.vmem [#allocation2], %s381_s15 }
  0x25   : > { %1134 = vrsqrt.f32 %v695_v31  ;;  %v510_v51 = vadd.f32 %v509_v45, %v508_v44  ;;  %v578_v40 = vmul.f32 %v1483_v37, %v1483_v37  ;;  %v1495_v45 = vld [vmem:[%s1337_s19 + $0x90] sm:$0xff]  ;;  %s1156_s16 = sshll.u32 %s1233_s27, 4  ;;  %s1157_s16 = int_to_ptr.vmem [resolvable:$false] %s1156_s16 }
  0x26   : > { %1136 = vrsqrt.f32 %v757_v39  ;;  %v474_v47 = vmax.f32 %v473_v43, 1e-24 }
  0x27   : > { %v511_v61 = vmax.f32 %v510_v51, 1e-24  ;;  %v580_v52 = vadd.f32 %v579_v42, %v578_v40 }
  0x28   : > { %1138 = vrsqrt.f32 %v474_v47 }
  0x29   : > { %1140 = vrsqrt.f32 %v511_v61 }
  0x2f   : > { %v1135_v56 = vpop.eup %1134 }
  0x30   : > { %v697_v57 = vmul.f32 %v1135_v56, %v1340_v1  ;;  %v699_v58 = vmul.f32 %v1135_v56, %v1060_v3  ;;  %v698_v63 = vmul.f32 %v1135_v56, %v1343_v2  ;;  %v700_v0 = vmul.f32 %v1135_v56, %v1347_v4  ;;  %v1034_v1 = vld [vmem:[%s1420_s23 + $0x8] sm:$0xff]  ;;  %v1137_v5 = vpop.eup %1136  ;;  %v435_v2 = vld [vmem:[%s1462_s30] sm:$0xff]  ;;  %s395_s23 = scalar_lea.vmem %s1615_s1, %s1069_s18  ;;  %s864_s18 = sshll.u32 %s382_s17, 4  ;;  %s1569_s18 = int_to_ptr.vmem [resolvable:$true] %s864_s18 }
  0x31   : > { %v543_v3 = vadd.f32 %v542_v55, %v541_v54  ;;  %v456_v4 = vand.u32 2147483647, %v1034_v1  ;;  %v759_v15 = vmul.f32 %v1137_v5, %v1356_v10  ;;  %v438_v32 = vmul.f32 %v437_v7, %v435_v2  ;;  %s1152_s12 = scalar_lea.vmem %s1569_s18, 16  ;;  %p1159_p1 = scmp.lt.s32.totalorder %s1569_s18, %s1157_s16 }
  0x32   : > { %703 = vperm.xlu0 %1132, %v697_v57   ;;  %716 = vperm.xlu1 %1133, %v699_v58   ;;  %v1139_v9 = vpop.eup %1138  ;;  %v581_v54 = vmul.f32 %v1495_v45, %v1495_v45  ;;  %v444_v55 = vand.u32 2147483647, %v1032_v46  ;;  %v1502_v57 = vld [vmem:[%s1337_s19 + $0x98] sm:$0xff]  ;;  %p1153_p12 = scmp.ne.s32.totalorder %s1569_s18, %s1152_s12 }
  0x33   : > { %v545_v19 = vadd.f32 %v544_v62, %v543_v3  ;;  %v476_v25 = vmul.f32 %v1139_v9, %v1376_v20  ;;  %v477_v26 = vmul.f32 %v1139_v9, %v1379_v22  ;;  %v478_v27 = vmul.f32 %v1139_v9, %v1382_v23  ;;  %v1141_v50 = vpop.eup %1140 }
  0x34   : > { %v479_v31 = vmul.f32 %v1139_v9, %v1385_v24  ;;  %v457_v10 = vmul.f32 %v1033_v8, %v456_v4  ;;  %v760_v20 = vmul.f32 %v1137_v5, %v1359_v11  ;;  %v761_v22 = vmul.f32 %v1137_v5, %v1362_v12  ;;  %p1154_p13 = pnand %p1153_p12, %p1314_p4 }
  0x35   : > { %v480_v34 = vmul.f32 %v476_v25, %v421_v16  ;;  %v481_v35 = vmul.f32 %v1025_v17, %v477_v26  ;;  %v483_v36 = vmul.f32 %v1026_v18, %v478_v27  ;;  %v547_v23 = vadd.f32 %v546_v21, %v545_v19 }
  0x36   : > { %709 = vperm.xlu0 %1132, %v698_v63   ;;  %723 = vperm.xlu1 %1133, %v700_v0   ;;  %v485_v39 = vmul.f32 %v1027_v33, %v479_v31  ;;  %v439_v43 = vmin.f32 %v438_v32, 0.5  ;;  %v762_v11 = vmul.f32 %v1137_v5, %v1365_v13  ;;  %v458_v12 = vmin.f32 %v457_v10, 0.5  ;;  %v1031_v0 = vld [vmem:[%s1462_s30 + $0x8] sm:$0xff]  ;;  %s1567_s30 = scalar_lea.hbm %s1621_s7, %s1066_s10  ;;  %p1155_p0 = pneg %p1154_p13 }
  0x37   : > { %v482_v24 = vadd.f32 %v481_v35, %v480_v34  ;;  %v548_v47 = vmax.f32 %v547_v23, 1e-24  ;;  %v513_v58 = vmul.f32 %v1141_v50, %v1392_v28  ;;  %v514_v59 = vmul.f32 %v1141_v50, %v1395_v29  ;;  %v1527_v35 = vld [vmem:[%s1337_s19 + $0x78] sm:$0xff] }
  0x38   : > { %v515_v13 = vmul.f32 %v1141_v50, %v1398_v30  ;;  %v516_v1 = vmul.f32 %v1141_v50, %v1414_v41  ;;  %v582_v3 = vadd.f32 %v581_v54, %v580_v52  ;;  %v583_v5 = vmul.f32 %v1502_v57, %v1502_v57  ;;  %v1536_v50 = vld [vmem:[%s1337_s19 + $0x40] sm:$0xff] }
  0x39   : > { %v484_v44 = vadd.f32 %v483_v36, %v482_v24  ;;  %1142 = vrsqrt.f32 %v548_v47  ;;  %v445_v30 = vmul.f32 %v1031_v0, %v444_v55  ;;  %v652_v55 = vmul.f32 %v1536_v50, %v1536_v50 }
  0x3a   : > { %730 = vperm.xlu0 %1132, %v451_v14   ;;  %765 = vperm.xlu1 %1133, %v759_v15   ;;  %v1512_v14 = vld [vmem:[%s1337_s19 + $0x60] sm:$0xff]  ;;  %v1515_v15 = vld [vmem:[%s1337_s19 + $0x68] sm:$0xff]  ;;  %v584_v19 = vadd.f32 %v583_v5, %v582_v3 }
  0x3b   : > { %v486_v51 = vadd.f32 %v485_v39, %v484_v44  ;;  %v620_v44 = vmul.f32 %v1527_v35, %v1527_v35 }
  0x3d   : > { %v487_v56 = vmul.f32 %v486_v51, %v439_v43  ;;  %v1539_v51 = vld [vmem:[%s1337_s19 + $0x48] sm:$0xff] }
  0x3e   : > { %771 = vperm.xlu0 %1132, %v760_v20   ;;  %778 = vperm.xlu1 %1133, %v761_v22  }
  0x3f   : > { %v488_v60 = vmul.f32 %v487_v56, %v476_v25  ;;  %v490_v61 = vmul.f32 %v487_v56, %v477_v26  ;;  %v492_v62 = vmul.f32 %v487_v56, %v478_v27  ;;  %v494_v63 = vmul.f32 %v487_v56, %v479_v31  ;;  %v1522_v26 = vld [vmem:[%s1337_s19 + $0x70] sm:$0xff] }
  0x40   : > { %v615_v25 = vmul.f32 %v1512_v14, %v1512_v14  ;;  %v585_v31 = vmax.f32 %v584_v19, 1e-24  ;;  %v618_v10 = vmul.f32 %v1522_v26, %v1522_v26  ;;  %v653_v56 = vmul.f32 %v1539_v51, %v1539_v51 }
  0x41   : > { %v489_v7 = vsub.f32 %v421_v16, %v488_v60  ;;  %v491_v28 = vsub.f32 %v1025_v17, %v490_v61  ;;  %v493_v29 = vsub.f32 %v1026_v18, %v492_v62  ;;  %v495_v2 = vsub.f32 %v1027_v33, %v494_v63 }
  0x42   : > { %785 = vperm.xlu0 %1132, %v762_v11   ;;  %792 = vperm.xlu1 %1133, %v458_v12   ;;  %v616_v16 = vmul.f32 %v1515_v15, %v1515_v15  ;;  %v446_v17 = vmin.f32 %v445_v30, 0.5  ;;  %1144 = vrsqrt.f32 %v585_v31  ;;  %v654_v62 = vadd.f32 %v653_v56, %v652_v55 }
  0x43   : > { %v517_v8 = vmul.f32 %v513_v58, %v489_v7  ;;  %v518_v4 = vmul.f32 %v514_v59, %v491_v28  ;;  %v520_v9 = vmul.f32 %v515_v13, %v493_v29  ;;  %v522_v21 = vmul.f32 %v516_v1, %v495_v2  ;;  %v1143_v27 = vpop.eup %1142 }
  0x44   : > { %v617_v33 = vadd.f32 %v616_v16, %v615_v25  ;;  %v550_v36 = vmul.f32 %v1143_v27, %v1432_v48  ;;  %v551_v20 = vmul.f32 %v1143_v27, %v1435_v49  ;;  %v552_v22 = vmul.f32 %v1143_v27, %v1445_v53 }
  0x45   : > { %v519_v41 = vadd.f32 %v518_v4, %v517_v8  ;;  %v553_v42 = vmul.f32 %v1143_v27, %v1471_v6 }
  0x46   : > { %v619_v43 = vadd.f32 %v618_v10, %v617_v33 }
  0x47   : > { %v521_v18 = vadd.f32 %v520_v9, %v519_v41 }
  0x48   : > { %v621_v52 = vadd.f32 %v620_v44, %v619_v43 }
  0x49   : > { %v523_v32 = vadd.f32 %v522_v21, %v521_v18 }
  0x4a   : > { %v622_v60 = vmax.f32 %v621_v52, 1e-24 }
  0x4b   : > { %v524_v34 = vmul.f32 %v523_v32, %v446_v17 }
  0x4c   : > { %1146 = vrsqrt.f32 %v622_v60 }
  0x4d   : > { %v525_v23 = vmul.f32 %v524_v34, %v513_v58  ;;  %v527_v24 = vmul.f32 %v524_v34, %v514_v59  ;;  %v529_v39 = vmul.f32 %v524_v34, %v515_v13  ;;  %v531_v40 = vmul.f32 %v524_v34, %v516_v1  ;;  %v1057_v59 = vld [vmem:[%s1337_s19 + $0x50] sm:$0xff]  ;;  %v1145_v13 = vpop.eup %1144  ;;  %v1058_v1 = vld [vmem:[%s1337_s19 + $0x58] sm:$0xff]  ;;  %s1158_s19 = scalar_lea.vmem %s1157_s16, 32 }
  0x4e   : > { %v655_v63 = vmul.f32 %v1057_v59, %v1057_v59  ;;  %v587_v3 = vmul.f32 %v1145_v13, %v1483_v37  ;;  %v588_v5 = vmul.f32 %v1145_v13, %v1486_v38  ;;  %v590_v8 = vmul.f32 %v1145_v13, %v1502_v57  ;;  %p1160_p2 = scmp.lt.s32.totalorder %s1158_s19, %s1152_s12 }
  0x4f   : > { %v526_v46 = vsub.f32 %v489_v7, %v525_v23  ;;  %v528_v48 = vsub.f32 %v491_v28, %v527_v24  ;;  %v530_v11 = vsub.f32 %v493_v29, %v529_v39  ;;  %v532_v49 = vsub.f32 %v495_v2, %v531_v40 }
  0x50   : > { %v589_v7 = vmul.f32 %v1145_v13, %v1495_v45  ;;  %v656_v4 = vadd.f32 %v655_v63, %v654_v62  ;;  %v657_v9 = vmul.f32 %v1058_v1, %v1058_v1  ;;  %p1161_p3 = por %p1160_p2, %p1159_p1 }
  0x51   : > { %v554_v12 = vmul.f32 %v550_v36, %v526_v46  ;;  %v555_v53 = vmul.f32 %v551_v20, %v528_v48  ;;  %v557_v47 = vmul.f32 %v552_v22, %v530_v11  ;;  %v559_v6 = vmul.f32 %v553_v42, %v532_v49 }
  0x52   : > { %v658_v18 = vadd.f32 %v657_v9, %v656_v4  ;;  %p1162_p5 = pnand %p1161_p3, %p1155_p0 }
  0x53   : > { %v556_v54 = vadd.f32 %v555_v53, %v554_v12 }
  0x54   : > { %v659_v32 = vmax.f32 %v658_v18, 1e-24  ;;  %v1029_v18 = vld [vmem:[%s395_s23 + $0x10] sm:$0xff] }
  0x55   : > { %v558_v58 = vadd.f32 %v557_v47, %v556_v54 }
  0x56   : > { %v1147_v31 = vpop.eup %1146  ;;  %1148 = vrsqrt.f32 %v659_v32 }
  0x57   : > { %v560_v61 = vadd.f32 %v559_v6, %v558_v58  ;;  %v624_v34 = vmul.f32 %v1147_v31, %v1512_v14  ;;  %v625_v57 = vmul.f32 %v1147_v31, %v1515_v15  ;;  %v627_v39 = vmul.f32 %v1147_v31, %v1527_v35 }
  0x59   : > { %v561_v0 = vmul.f32 2.0, %v560_v61 }
  0x5b   : > { %v562_v28 = vmul.f32 %v561_v0, %v550_v36  ;;  %v564_v29 = vmul.f32 %v561_v0, %v551_v20  ;;  %v566_v2 = vmul.f32 %v561_v0, %v552_v22  ;;  %v568_v30 = vmul.f32 %v561_v0, %v553_v42 }
  0x5c   : > { %v626_v36 = vmul.f32 %v1147_v31, %v1522_v26  ;;  %v1030_v31 = vld [vmem:[%s395_s23 + $0x18] sm:$0xff] }
  0x5d   : > { %v563_v19 = vsub.f32 %v526_v46, %v562_v28  ;;  %v565_v41 = vsub.f32 %v528_v48, %v564_v29  ;;  %v567_v21 = vsub.f32 %v530_v11, %v566_v2  ;;  %v569_v25 = vsub.f32 %v532_v49, %v568_v30 }
  0x5f   : > { %v591_v16 = vmul.f32 %v587_v3, %v563_v19  ;;  %v592_v17 = vmul.f32 %v588_v5, %v565_v41  ;;  %v594_v37 = vmul.f32 %v589_v7, %v567_v21  ;;  %v596_v27 = vmul.f32 %v590_v8, %v569_v25 }
  0x60   : > { %v1149_v15 = vpop.eup %1148 }
  0x61   : > { %v593_v38 = vadd.f32 %v592_v17, %v591_v16  ;;  %v661_v47 = vmul.f32 %v1149_v15, %v1536_v50  ;;  %v662_v52 = vmul.f32 %v1149_v15, %v1539_v51  ;;  %v663_v54 = vmul.f32 %v1149_v15, %v1057_v59 }
  0x62   : > { %v664_v58 = vmul.f32 %v1149_v15, %v1058_v1 }
  0x63   : > { %v595_v45 = vadd.f32 %v594_v37, %v593_v38 }
  0x65   : > { %v597_v33 = vadd.f32 %v596_v27, %v595_v45 }
  0x67   : > { %v598_v10 = vmul.f32 2.0, %v597_v33 }
  0x69   : > { %v599_v20 = vmul.f32 %v598_v10, %v587_v3  ;;  %v601_v22 = vmul.f32 %v598_v10, %v588_v5  ;;  %v603_v23 = vmul.f32 %v598_v10, %v589_v7  ;;  %v605_v24 = vmul.f32 %v598_v10, %v590_v8 }
  0x6b   : > { %v600_v40 = vsub.f32 %v563_v19, %v599_v20  ;;  %v602_v42 = vsub.f32 %v565_v41, %v601_v22  ;;  %v604_v43 = vsub.f32 %v567_v21, %v603_v23  ;;  %v606_v44 = vsub.f32 %v569_v25, %v605_v24  ;;  %v428_v41 = vld [vmem:[%s395_s23] sm:$0xff]  ;;  %v1028_v25 = vld [vmem:[%s395_s23 + $0x8] sm:$0xff] }
  0x6d   : > { %v628_v46 = vmul.f32 %v624_v34, %v600_v40  ;;  %v629_v48 = vmul.f32 %v625_v57, %v602_v42  ;;  %v631_v11 = vmul.f32 %v626_v36, %v604_v43  ;;  %v633_v14 = vmul.f32 %v627_v39, %v606_v44 }
  0x6f   : > { %v630_v49 = vadd.f32 %v629_v48, %v628_v46 }
  0x71   : > { %v632_v12 = vadd.f32 %v631_v11, %v630_v49 }
  0x73   : > { %v634_v53 = vadd.f32 %v633_v14, %v632_v12 }
  0x75   : > { %v635_v26 = vmul.f32 2.0, %v634_v53 }
  0x77   : > { %v636_v6 = vmul.f32 %v635_v26, %v624_v34  ;;  %v638_v35 = vmul.f32 %v635_v26, %v625_v57  ;;  %v640_v55 = vmul.f32 %v635_v26, %v626_v36  ;;  %v642_v56 = vmul.f32 %v635_v26, %v627_v39 }
  0x79   : > { %v637_v13 = vsub.f32 %v600_v40, %v636_v6  ;;  %v639_v60 = vsub.f32 %v602_v42, %v638_v35  ;;  %v641_v61 = vsub.f32 %v604_v43, %v640_v55  ;;  %v643_v62 = vsub.f32 %v606_v44, %v642_v56 }
  0x7b   : > { %v665_v63 = vmul.f32 %v661_v47, %v637_v13  ;;  %v666_v0 = vmul.f32 %v662_v52, %v639_v60  ;;  %v668_v3 = vmul.f32 %v663_v54, %v641_v61  ;;  %v670_v7 = vmul.f32 %v664_v58, %v643_v62 }
  0x7d   : > { %v667_v5 = vadd.f32 %v666_v0, %v665_v63 }
  0x7f   : > { %v669_v28 = vadd.f32 %v668_v3, %v667_v5 }
  0x81   : > { %v671_v50 = vadd.f32 %v670_v7, %v669_v28 }
  0x83   : > { %v672_v29 = vmul.f32 2.0, %v671_v50 }
  0x85   : > { %v675_v51 = vmul.f32 %v672_v29, %v662_v52  ;;  %v673_v59 = vmul.f32 %v672_v29, %v661_v47  ;;  %v679_v2 = vmul.f32 %v672_v29, %v664_v58  ;;  %v677_v30 = vmul.f32 %v672_v29, %v663_v54 }
  0x87   : > { %v676_v8 = vsub.f32 %v639_v60, %v675_v51  ;;  %v674_v4 = vsub.f32 %v637_v13, %v673_v59  ;;  %v680_v1 = vsub.f32 %v643_v62, %v679_v2  ;;  %v678_v9 = vsub.f32 %v641_v61, %v677_v30 }
  0x89   : > { %813 = vperm.xlu1 %1133, %v676_v8   ;;  %806 = vperm.xlu0 %1132, %v674_v4  }
  0x8d   : > { %829 = vperm.xlu1 %1133, %v680_v1   ;;  %821 = vperm.xlu0 %1132, %v678_v9  }
  0xb1   : > { %v704_v19 = vpop.permute.xlu0 %703  ;;  %v717_v16 = vpop.permute.xlu1 %716 }
  0xb2   : > { %v706_v17 = vmul.f32 %v704_v19, %v428_v41  ;;  %v719_v38 = vmul.f32 %v1029_v18, %v717_v16 }
  0xb5   : > { %v710_v21 = vpop.permute.xlu0 %709  ;;  %v724_v45 = vpop.permute.xlu1 %723 }
  0xb6   : > { %v712_v37 = vmul.f32 %v1028_v25, %v710_v21  ;;  %v726_v32 = vmul.f32 %v1030_v31, %v724_v45 }
  0xb8   : > { %v713_v27 = vadd.f32 %v712_v37, %v706_v17 }
  0xb9   : > { %v731_v34 = vpop.permute.xlu0 %730  ;;  %v766_v22 = vpop.permute.xlu1 %765 }
  0xba   : > { %v720_v33 = vadd.f32 %v719_v38, %v713_v27 }
  0xbc   : > { %v727_v10 = vadd.f32 %v726_v32, %v720_v33 }
  0xbd   : > { %v772_v40 = vpop.permute.xlu0 %771  ;;  %v779_v48 = vpop.permute.xlu1 %778 }
  0xbe   : > { %v733_v57 = vmul.f32 %v731_v34, %v727_v10 }
  0xc0   : > { %v734_v36 = vmul.f32 %v733_v57, %v704_v19  ;;  %v736_v20 = vmul.f32 %v733_v57, %v710_v21  ;;  %v738_v39 = vmul.f32 %v733_v57, %v717_v16  ;;  %v740_v46 = vmul.f32 %v733_v57, %v724_v45 }
  0xc1   : > { %v786_v12 = vpop.permute.xlu0 %785  ;;  %v793_v47 = vpop.permute.xlu1 %792 }
  0xc2   : > { %v735_v23 = vsub.f32 %v428_v41, %v734_v36  ;;  %v737_v24 = vsub.f32 %v1028_v25, %v736_v20  ;;  %v739_v44 = vsub.f32 %v1029_v18, %v738_v39  ;;  %v741_v14 = vsub.f32 %v1030_v31, %v740_v46 }
  0xc4   : > { %v768_v42 = vmul.f32 %v766_v22, %v735_v23  ;;  %v774_v43 = vmul.f32 %v772_v40, %v737_v24  ;;  %v781_v49 = vmul.f32 %v779_v48, %v739_v44  ;;  %v788_v53 = vmul.f32 %v786_v12, %v741_v14 }
  0xc6   : > { %v775_v11 = vadd.f32 %v774_v43, %v768_v42 }
  0xc8   : > { %v782_v15 = vadd.f32 %v781_v49, %v775_v11 }
  0xca   : > { %v789_v26 = vadd.f32 %v788_v53, %v782_v15 }
  0xcc   : > { %v795_v52 = vmul.f32 %v793_v47, %v789_v26 }
  0xce   : > { %v798_v54 = vmul.f32 %v795_v52, %v772_v40  ;;  %v796_v6 = vmul.f32 %v795_v52, %v766_v22  ;;  %v802_v56 = vmul.f32 %v795_v52, %v786_v12  ;;  %v800_v58 = vmul.f32 %v795_v52, %v779_v48 }
  0xd0   : > { %v799_v35 = vsub.f32 %v737_v24, %v798_v54  ;;  %v797_v55 = vsub.f32 %v735_v23, %v796_v6  ;;  %v803_v3 = vsub.f32 %v741_v14, %v802_v56  ;;  %v801_v5 = vsub.f32 %v739_v44, %v800_v58 }
 0x108   : > { %v814_v13 = vpop.permute.xlu1 %813  ;;  %v807_v60 = vpop.permute.xlu0 %806 }
 0x109   : > { %v816_v61 = vsub.f32 %v814_v13, %v799_v35  ;;  %v809_v62 = vsub.f32 %v807_v60, %v797_v55 }
 0x10b   : > { %v817_v63 = vmul.f32 %v816_v61, %v816_v61  ;;  %v810_v0 = vmul.f32 %v809_v62, %v809_v62 }
 0x10c   : > { %v830_v7 = vpop.permute.xlu1 %829  ;;  %v822_v28 = vpop.permute.xlu0 %821 }
 0x10d   : > { %v832_v50 = vsub.f32 %v830_v7, %v803_v3  ;;  %v824_v29 = vsub.f32 %v822_v28, %v801_v5  ;;  %v818_v51 = vadd.f32 %v817_v63, %v810_v0 }
 0x10f   : > { %v825_v59 = vmul.f32 %v824_v29, %v824_v29  ;;  %v833_v2 = vmul.f32 %v832_v50, %v832_v50 }
 0x111   : > { %v826_v30 = vadd.f32 %v825_v59, %v818_v51 }
 0x113   : > { %v834_v8 = vadd.f32 %v833_v2, %v826_v30 }
 0x115   : > { %1150 = vrsqrt.f32 %v834_v8  ;;  %vm837_vm0 = vcmp.eq.f32.partialorder %v834_v8, inf  ;;  %v840_v9 = vand.u32 2147483648, %v834_v8  ;;  %vm839_vm1 = vcmp.eq.f32.partialorder %v834_v8, 0.0 }
 0x11f   : > { %v1151_v4 = vpop.eup %1150 }
 0x120   : > { %v836_v1 = vmul.f32 %v1151_v4, %v834_v8 }
 0x122   : > { %v838_v19 = vsel %vm837_vm0, %v834_v8, %v836_v1 }
 0x123   : > { %v841_v41 = vsel %vm839_vm1, %v840_v9, %v838_v19 }
 0x124   : > { %v842_v21 = vrot.slane %v841_v41, 4 }
 0x126   : > { %v843_v25 = vadd.f32 %v842_v21, %v841_v41 }
 0x128   : > { %v844_v16 = vrot.slane %v843_v25, 2 }
 0x12a   : > { %v845_v17 = vadd.f32 %v844_v16, %v843_v25 }
 0x12c   : > { %v846_v37 = vrot.slane %v845_v17, 1 }
 0x12e   : > { %v847_v18 = vadd.f32 %v846_v37, %v845_v17 }
 0x130   : > { %v848_v38 = vsub.f32 6.0, %v847_v18 }
 0x132   : > { %849 = vst [vmem:[%s382_s17] sm:$0x1] %v848_v38 }
 0x133   : > { %1165 = shalt.err (!%p1162_p5)
}
 0x134   : > { %s1166_s20 = scalar_lea.hbm %s1567_s30, 16  ;;  %s1170_s10 = scalar_lea.hbm %s1621_s7, 32 }
 0x135   : > { %p1167_p6 = scmp.ne.s32.totalorder %s1567_s30, %s1166_s20  ;;  %p1171_p10 = scmp.lt.u32.totalorder %s1567_s30, %s1621_s7 }
 0x136   : > { %p1172_p11 = scmp.lt.u32.totalorder %s1170_s10, %s1166_s20  ;;  %p1174_p13 = scmp.lt.u32.totalorder %s1166_s20, %s1567_s30 }
 0x137   : > { %p1168_p7 = pnand %p1167_p6, %p1314_p4 }
 0x138   : > { %p1173_p12 = por %p1172_p11, %p1171_p10 }
 0x139   : > { %p1169_p9 = pneg %p1168_p7 }
 0x13a   : > { %p1175_p0 = por %p1174_p13, %p1173_p12 }
 0x13c   : > { %p1176_p1 = pnand %p1175_p0, %p1169_p9 }
 0x13e   : > { %1179 = shalt.err (!%p1176_p1)
}
 0x13f   : > { %1076 = dma.vmem_to_hbm [thread:$0]  (%p1314_p4), %s1569_s18, 16, %s1567_s30, %s851_s8  }
 0x140 PF: > { %p1082_p2 = scmp.ge.s32.totalorder %s1230_s29, 2  ;;  %s876_s22 = sand.u32 1, %s1210_s24  }
 0x141   : > { %s877_s12 = scalar_lea.sflag [#allocation3], %s876_s22 }
 0x142   : > { %p1079_p3 = pnand %p1082_p2, %p1321_p8 }
 0x144   : > { %1205 = dma.done.wait (!%p1079_p3), %s877_s12, 16  }
 0x145   : > { %1207 = vsyncadd (!%p1079_p3), %s877_s12, 4294967280  ;;  %s20_s29 = sadd.s32 1, %s1230_s29   ;;  %s1624_s24 = smov %s1214_s25 }
 0x146   : > { %p17_p5 = scmp.ge.s32.totalorder %s20_s29, 4   ;;  %s1625_s25 = smov %s1218_s26 }
 0x147   : > { %s1626_s26 = smov %s1327_s14  ;;  %s1627_s27 = smov %s1226_s28 }
 0x148   : > { %s1628_s28 = smov %s1630_s9  ;;  %19 = sbr.rel (!%p17_p5) target bundleno = 4 (0x4), region = 142 }
 0x14f   :  { %881 = vsyncpa [#allocation3], 1 }
 0x150   :  { %883 = vsyncpa [#allocation3 + $0x1], 1 }

</bundles_post_ra>
